<compile_context>
chip_gen: v7x
topology: tpu7x:2x2x1
jax: 0.10.0
libtpu: 0.0.40
codegen_flags: <defaults>
</compile_context>

<pallas_src>
import jax
import jax.numpy as jnp
from jax import lax
from jax.experimental import pallas as pl
from jax.experimental.pallas import tpu as pltpu

# ---- model sizes (small, consistent with the module) ----
VOCAB = 64        # input_size (embedding rows / vocab)
H = 32            # hidden_size
OUT = 64          # output_size
OUT_PAD = 128     # output features padded to a full 128-lane vreg for a dense store
T = 8             # sequence length
NUM_LAYERS = 2


def musicrnn_kernel(x_ref,        # (T, H)       embedded sequence
                    wih0_ref,     # (H, 4H)      layer-0 W_ih^T
                    whh0_ref,     # (H, 4H)      layer-0 W_hh^T
                    b0_ref,       # (1, 4H)      b_ih0 + b_hh0
                    w1_ref,       # (2H, 4H)     layer-1 fused [W_ih^T ; W_hh^T]
                    b1_ref,       # (1, 4H)      b_ih1 + b_hh1
                    wout_ref,     # (H, OUT_PAD) output Linear W^T (zero-padded cols)
                    bout_ref,     # (1, OUT_PAD) output bias (zero-padded)
                    out_ref):     # (T, OUT_PAD)
    f32 = jnp.float32

    # Hoisted layer-0 input projection: single batched (T,H)@(H,4H) matmul + bias.
    g0_all = (jnp.dot(x_ref[...], wih0_ref[...], preferred_element_type=f32)
              + b0_ref[...])                                           # (T, 4H)

    whh0 = whh0_ref[...]
    w1 = w1_ref[...]
    b1 = b1_ref[...]

    # Static lane mask: PyTorch LSTM gate order is [i, f, g, o]; only the 'g'
    # chunk (lanes [2H, 3H)) uses tanh, the rest use sigmoid.
    lane = lax.broadcasted_iota(jnp.int32, (1, 4 * H), 1)
    is_g = (lane >= 2 * H) & (lane < 3 * H)

    def activate(gates):
        # Full-width transcendentals (EUP slot) + a VPU select; no per-gate
        # slicing before the nonlinearity.
        return jnp.where(is_g, jnp.tanh(gates), jax.nn.sigmoid(gates))

    def combine(act, c_prev):
        i = act[:, 0 * H:1 * H]
        f = act[:, 1 * H:2 * H]
        g = act[:, 2 * H:3 * H]
        o = act[:, 3 * H:4 * H]
        c_new = f * c_prev + i * g
        h_new = o * jnp.tanh(c_new)
        return h_new, c_new

    zero = jnp.zeros((1, H), f32)
    h0, c0, h1, c1 = zero, zero, zero, zero
    hs = []
    # Fully unrolled time loop (T=8): all slice indices static, carries stay in vregs.
    for t in range(T):
        # layer 0: only the recurrent matmul is on the critical path
        gates0 = g0_all[t:t + 1, :] + jnp.dot(h0, whh0, preferred_element_type=f32)
        h0, c0 = combine(activate(gates0), c0)
        # layer 1: single fused (1,2H)@(2H,4H) matmul
        gates1 = (jnp.dot(jnp.concatenate([h0, h1], axis=1), w1,
                          preferred_element_type=f32) + b1)
        h1, c1 = combine(activate(gates1), c1)
        hs.append(h1)

    hs_all = jnp.concatenate(hs, axis=0)                               # (T, H)
    # Batched output Linear + one lane-dense (T, 128) store.
    out_ref[...] = (jnp.dot(hs_all, wout_ref[...], preferred_element_type=f32)
                    + bout_ref[...]).astype(out_ref.dtype)


def musicrnn_forward(seq, params):
    """seq: (T,) int32 token ids. Returns (T, OUT) float32, like the PyTorch module."""
    # TODO(synk): embedding gather could be fused in-kernel via scalar-prefetched seq;
    # kept as XLA glue here since it is a tiny one-off gather.
    x = params["embedding"][seq].astype(jnp.float32)                   # (T, H)

    full = lambda shape: pl.BlockSpec(shape, lambda i: tuple(0 for _ in shape))

    out_pad = pl.pallas_call(
        musicrnn_kernel,
        out_shape=jax.ShapeDtypeStruct((T, OUT_PAD), jnp.float32),
        grid=(1,),                                                     # single invocation
        in_specs=[
            full((T, H)),                                              # x
            full((H, 4 * H)),                                          # wih0^T
            full((H, 4 * H)),                                          # whh0^T
            full((1, 4 * H)),                                          # b0
            full((2 * H, 4 * H)),                                      # layer-1 fused W
            full((1, 4 * H)),                                          # b1
            full((H, OUT_PAD)),                                        # wout^T (padded)
            full((1, OUT_PAD)),                                        # bout (padded)
        ],
        out_specs=full((T, OUT_PAD)),
        compiler_params=pltpu.CompilerParams(
            dimension_semantics=("arbitrary",)),
    )(x,
      params["wih0_t"], params["whh0_t"], params["b0"],
      params["w1_fused"], params["b1"],
      params["wout_pad_t"], params["bout_pad"])

    return out_pad[:, :OUT]


def make_params(key):
    """Deterministic init mirroring PyTorch shapes (LSTM: uniform(+/- 1/sqrt(H)))."""
    k = 1.0 / jnp.sqrt(jnp.float32(H))
    keys = jax.random.split(key, 12)
    u = lambda kk, shape: jax.random.uniform(kk, shape, jnp.float32, -k, k)

    embedding = jax.random.normal(keys[0], (VOCAB, H), jnp.float32)

    # PyTorch layout: weight_ih (4H, in), weight_hh (4H, H), biases (4H,)
    wih0 = u(keys[1], (4 * H, H)); whh0 = u(keys[2], (4 * H, H))
    bih0 = u(keys[3], (4 * H,));   bhh0 = u(keys[4], (4 * H,))
    wih1 = u(keys[5], (4 * H, H)); whh1 = u(keys[6], (4 * H, H))
    bih1 = u(keys[7], (4 * H,));   bhh1 = u(keys[8], (4 * H,))
    wout = u(keys[9], (OUT, H));   bout = u(keys[10], (OUT,))

    # Padded / pre-transposed / fused kernel views.
    wout_pad_t = jnp.zeros((H, OUT_PAD), jnp.float32).at[:, :OUT].set(wout.T)
    bout_pad = jnp.zeros((1, OUT_PAD), jnp.float32).at[0, :OUT].set(bout)

    return {
        "embedding": embedding,
        "wih0_t": wih0.T,
        "whh0_t": whh0.T,
        "b0": (bih0 + bhh0).reshape(1, 4 * H),
        "w1_fused": jnp.concatenate([wih1.T, whh1.T], axis=0),   # (2H, 4H)
        "b1": (bih1 + bhh1).reshape(1, 4 * H),
        "wout_pad_t": wout_pad_t,
        "bout_pad": bout_pad,
        # raw copies for the reference
        "_raw": (wih0, whh0, bih0, bhh0, wih1, whh1, bih1, bhh1, wout, bout),
    }


def reference_forward(seq, params):
    """Pure-JAX reference matching torch.nn.LSTM semantics (zero initial state)."""
    wih0, whh0, bih0, bhh0, wih1, whh1, bih1, bhh1, wout, bout = params["_raw"]
    x = params["embedding"][seq]                                  # (T, H)

    def run_layer(xs, wih, whh, b):
        def step(carry, x_t):
            h, c = carry
            gates = x_t @ wih.T + h @ whh.T + b                   # (4H,)
            i = jax.nn.sigmoid(gates[0 * H:1 * H])
            f = jax.nn.sigmoid(gates[1 * H:2 * H])
            g = jnp.tanh(gates[2 * H:3 * H])
            o = jax.nn.sigmoid(gates[3 * H:4 * H])
            c = f * c + i * g
            h = o * jnp.tanh(c)
            return (h, c), h
        _, hs = lax.scan(step, (jnp.zeros(H), jnp.zeros(H)), xs)
        return hs

    h1 = run_layer(x, wih0, whh0, bih0 + bhh0)
    h2 = run_layer(h1, wih1, whh1, bih1 + bhh1)
    return h2 @ wout.T + bout


if __name__ == "__main__":
    key = jax.random.PRNGKey(0)
    kp, ks = jax.random.split(key)
    params = make_params(kp)
    seq = jax.random.randint(ks, (T,), 0, VOCAB, dtype=jnp.int32)

    out = jax.block_until_ready(musicrnn_forward(seq, params))
    ref = jax.block_until_ready(reference_forward(seq, params))

    assert out.shape == (T, OUT)
    assert jnp.allclose(out, ref, atol=5e-5, rtol=5e-5), \
        f"mismatch: max abs err {jnp.max(jnp.abs(out - ref))}"
    print("KERNEL_OK")
</pallas_src>

<mosaic_0001>
module attributes {stable_mosaic.version = 11 : i64} {
  func.func @musicrnn_kernel(%arg0: i32, %arg1: memref<8x32xf32, #tpu.memory_space<vmem>>, %arg2: memref<32x128xf32, #tpu.memory_space<vmem>>, %arg3: memref<32x128xf32, #tpu.memory_space<vmem>>, %arg4: memref<1x128xf32, #tpu.memory_space<vmem>>, %arg5: memref<64x128xf32, #tpu.memory_space<vmem>>, %arg6: memref<1x128xf32, #tpu.memory_space<vmem>>, %arg7: memref<32x128xf32, #tpu.memory_space<vmem>>, %arg8: memref<1x128xf32, #tpu.memory_space<vmem>>, %arg9: memref<8x128xf32, #tpu.memory_space<vmem>>) attributes {dimension_semantics = [#tpu.dimension_semantics<arbitrary>], iteration_bounds = array<i64: 1>, scalar_prefetch = 0 : i64, scratch_operands = 0 : i64, tpu.core_type = #tpu.core_type<tc>, window_params = [{pipeline_mode = #tpu.pipeline_mode<synchronous>, transform_indices = @transform_0, window_bounds = array<i64: 8, 32>}, {pipeline_mode = #tpu.pipeline_mode<synchronous>, transform_indices = @transform_1, window_bounds = array<i64: 32, 128>}, {pipeline_mode = #tpu.pipeline_mode<synchronous>, transform_indices = @transform_2, window_bounds = array<i64: 32, 128>}, {pipeline_mode = #tpu.pipeline_mode<synchronous>, transform_indices = @transform_3, window_bounds = array<i64: 1, 128>}, {pipeline_mode = #tpu.pipeline_mode<synchronous>, transform_indices = @transform_4, window_bounds = array<i64: 64, 128>}, {pipeline_mode = #tpu.pipeline_mode<synchronous>, transform_indices = @transform_5, window_bounds = array<i64: 1, 128>}, {pipeline_mode = #tpu.pipeline_mode<synchronous>, transform_indices = @transform_6, window_bounds = array<i64: 32, 128>}, {pipeline_mode = #tpu.pipeline_mode<synchronous>, transform_indices = @transform_7, window_bounds = array<i64: 1, 128>}, {pipeline_mode = #tpu.pipeline_mode<synchronous>, transform_indices = @transform_8, window_bounds = array<i64: 8, 128>}]} {
    %c0 = arith.constant 0 : index
    %c0_0 = arith.constant 0 : index
    %0 = vector.load %arg1[%c0, %c0_0] : memref<8x32xf32, #tpu.memory_space<vmem>>, vector<8x32xf32>
    %c0_1 = arith.constant 0 : index
    %c0_2 = arith.constant 0 : index
    %1 = vector.load %arg2[%c0_1, %c0_2] : memref<32x128xf32, #tpu.memory_space<vmem>>, vector<32x128xf32>
    %cst = arith.constant dense<0.000000e+00> : vector<8x128xf32>
    %2 = tpu.matmul %0, %1, %cst {dimension_numbers = #tpu.dot_dimension_numbers<[1], [0], [0], [1], [0, 0, 1, 1], [], []>} : vector<8x32xf32>, vector<32x128xf32>, vector<8x128xf32> -> vector<8x128xf32>
    %c0_3 = arith.constant 0 : index
    %c0_4 = arith.constant 0 : index
    %3 = vector.load %arg4[%c0_3, %c0_4] : memref<1x128xf32, #tpu.memory_space<vmem>>, vector<1x128xf32>
    %4 = vector.broadcast %3 : vector<1x128xf32> to vector<8x128xf32>
    %5 = arith.addf %2, %4 : vector<8x128xf32>
    %c0_5 = arith.constant 0 : index
    %c0_6 = arith.constant 0 : index
    %6 = vector.load %arg3[%c0_5, %c0_6] : memref<32x128xf32, #tpu.memory_space<vmem>>, vector<32x128xf32>
    %c0_7 = arith.constant 0 : index
    %c0_8 = arith.constant 0 : index
    %7 = vector.load %arg5[%c0_7, %c0_8] : memref<64x128xf32, #tpu.memory_space<vmem>>, vector<64x128xf32>
    %c0_9 = arith.constant 0 : index
    %c0_10 = arith.constant 0 : index
    %8 = vector.load %arg6[%c0_9, %c0_10] : memref<1x128xf32, #tpu.memory_space<vmem>>, vector<1x128xf32>
    %9 = tpu.iota {dimensions = array<i32: 1>} : vector<1x128xi32>
    %c64_i32 = arith.constant 64 : i32
    %10 = vector.broadcast %c64_i32 : i32 to vector<1x128xi32>
    %11 = arith.cmpi sge, %9, %10 : vector<1x128xi32>
    %c96_i32 = arith.constant 96 : i32
    %12 = vector.broadcast %c96_i32 : i32 to vector<1x128xi32>
    %13 = arith.cmpi slt, %9, %12 : vector<1x128xi32>
    %14 = arith.andi %11, %13 : vector<1x128xi1>
    %cst_11 = arith.constant 0.000000e+00 : f32
    %15 = vector.broadcast %cst_11 : f32 to vector<1x32xf32>
    %16 = vector.extract_strided_slice %5 {offsets = [0, 0], sizes = [1, 128], strides = [1, 1]} : vector<8x128xf32> to vector<1x128xf32>
    %cst_12 = arith.constant dense<0.000000e+00> : vector<1x128xf32>
    %17 = tpu.matmul %15, %6, %cst_12 {dimension_numbers = #tpu.dot_dimension_numbers<[1], [0], [0], [1], [0, 0, 1, 1], [], []>} : vector<1x32xf32>, vector<32x128xf32>, vector<1x128xf32> -> vector<1x128xf32>
    %18 = arith.addf %16, %17 : vector<1x128xf32>
    %19 = math.tanh %18 : vector<1x128xf32>
    %20 = arith.negf %18 : vector<1x128xf32>
    %21 = math.exp %20 : vector<1x128xf32>
    %cst_13 = arith.constant 1.000000e+00 : f32
    %22 = vector.broadcast %cst_13 : f32 to vector<1x128xf32>
    %23 = arith.addf %22, %21 : vector<1x128xf32>
    %24 = arith.divf %22, %23 : vector<1x128xf32>
    %25 = arith.select %14, %19, %24 : vector<1x128xi1>, vector<1x128xf32>
    %26 = vector.extract_strided_slice %25 {offsets = [0, 0], sizes = [1, 32], strides = [1, 1]} : vector<1x128xf32> to vector<1x32xf32>
    %27 = vector.extract_strided_slice %25 {offsets = [0, 32], sizes = [1, 32], strides = [1, 1]} : vector<1x128xf32> to vector<1x32xf32>
    %28 = vector.extract_strided_slice %25 {offsets = [0, 64], sizes = [1, 32], strides = [1, 1]} : vector<1x128xf32> to vector<1x32xf32>
    %29 = vector.extract_strided_slice %25 {offsets = [0, 96], sizes = [1, 32], strides = [1, 1]} : vector<1x128xf32> to vector<1x32xf32>
    %30 = arith.mulf %27, %15 : vector<1x32xf32>
    %31 = arith.mulf %26, %28 : vector<1x32xf32>
    %32 = arith.addf %30, %31 : vector<1x32xf32>
    %33 = math.tanh %32 : vector<1x32xf32>
    %34 = arith.mulf %29, %33 : vector<1x32xf32>
    %35 = tpu.concatenate %34, %15 in 1 : vector<1x32xf32>, vector<1x32xf32> -> vector<1x64xf32>
    %cst_14 = arith.constant dense<0.000000e+00> : vector<1x128xf32>
    %36 = tpu.matmul %35, %7, %cst_14 {dimension_numbers = #tpu.dot_dimension_numbers<[1], [0], [0], [1], [0, 0, 1, 1], [], []>} : vector<1x64xf32>, vector<64x128xf32>, vector<1x128xf32> -> vector<1x128xf32>
    %37 = arith.addf %36, %8 : vector<1x128xf32>
    %38 = math.tanh %37 : vector<1x128xf32>
    %39 = arith.negf %37 : vector<1x128xf32>
    %40 = math.exp %39 : vector<1x128xf32>
    %cst_15 = arith.constant 1.000000e+00 : f32
    %41 = vector.broadcast %cst_15 : f32 to vector<1x128xf32>
    %42 = arith.addf %41, %40 : vector<1x128xf32>
    %43 = arith.divf %41, %42 : vector<1x128xf32>
    %44 = arith.select %14, %38, %43 : vector<1x128xi1>, vector<1x128xf32>
    %45 = vector.extract_strided_slice %44 {offsets = [0, 0], sizes = [1, 32], strides = [1, 1]} : vector<1x128xf32> to vector<1x32xf32>
    %46 = vector.extract_strided_slice %44 {offsets = [0, 32], sizes = [1, 32], strides = [1, 1]} : vector<1x128xf32> to vector<1x32xf32>
    %47 = vector.extract_strided_slice %44 {offsets = [0, 64], sizes = [1, 32], strides = [1, 1]} : vector<1x128xf32> to vector<1x32xf32>
    %48 = vector.extract_strided_slice %44 {offsets = [0, 96], sizes = [1, 32], strides = [1, 1]} : vector<1x128xf32> to vector<1x32xf32>
    %49 = arith.mulf %46, %15 : vector<1x32xf32>
    %50 = arith.mulf %45, %47 : vector<1x32xf32>
    %51 = arith.addf %49, %50 : vector<1x32xf32>
    %52 = math.tanh %51 : vector<1x32xf32>
    %53 = arith.mulf %48, %52 : vector<1x32xf32>
    %54 = vector.extract_strided_slice %5 {offsets = [1, 0], sizes = [1, 128], strides = [1, 1]} : vector<8x128xf32> to vector<1x128xf32>
    %cst_16 = arith.constant dense<0.000000e+00> : vector<1x128xf32>
    %55 = tpu.matmul %34, %6, %cst_16 {dimension_numbers = #tpu.dot_dimension_numbers<[1], [0], [0], [1], [0, 0, 1, 1], [], []>} : vector<1x32xf32>, vector<32x128xf32>, vector<1x128xf32> -> vector<1x128xf32>
    %56 = arith.addf %54, %55 : vector<1x128xf32>
    %57 = math.tanh %56 : vector<1x128xf32>
    %58 = arith.negf %56 : vector<1x128xf32>
    %59 = math.exp %58 : vector<1x128xf32>
    %cst_17 = arith.constant 1.000000e+00 : f32
    %60 = vector.broadcast %cst_17 : f32 to vector<1x128xf32>
    %61 = arith.addf %60, %59 : vector<1x128xf32>
    %62 = arith.divf %60, %61 : vector<1x128xf32>
    %63 = arith.select %14, %57, %62 : vector<1x128xi1>, vector<1x128xf32>
    %64 = vector.extract_strided_slice %63 {offsets = [0, 0], sizes = [1, 32], strides = [1, 1]} : vector<1x128xf32> to vector<1x32xf32>
    %65 = vector.extract_strided_slice %63 {offsets = [0, 32], sizes = [1, 32], strides = [1, 1]} : vector<1x128xf32> to vector<1x32xf32>
    %66 = vector.extract_strided_slice %63 {offsets = [0, 64], sizes = [1, 32], strides = [1, 1]} : vector<1x128xf32> to vector<1x32xf32>
    %67 = vector.extract_strided_slice %63 {offsets = [0, 96], sizes = [1, 32], strides = [1, 1]} : vector<1x128xf32> to vector<1x32xf32>
    %68 = arith.mulf %65, %32 : vector<1x32xf32>
    %69 = arith.mulf %64, %66 : vector<1x32xf32>
    %70 = arith.addf %68, %69 : vector<1x32xf32>
    %71 = math.tanh %70 : vector<1x32xf32>
    %72 = arith.mulf %67, %71 : vector<1x32xf32>
    %73 = tpu.concatenate %72, %53 in 1 : vector<1x32xf32>, vector<1x32xf32> -> vector<1x64xf32>
    %cst_18 = arith.constant dense<0.000000e+00> : vector<1x128xf32>
    %74 = tpu.matmul %73, %7, %cst_18 {dimension_numbers = #tpu.dot_dimension_numbers<[1], [0], [0], [1], [0, 0, 1, 1], [], []>} : vector<1x64xf32>, vector<64x128xf32>, vector<1x128xf32> -> vector<1x128xf32>
    %75 = arith.addf %74, %8 : vector<1x128xf32>
    %76 = math.tanh %75 : vector<1x128xf32>
    %77 = arith.negf %75 : vector<1x128xf32>
    %78 = math.exp %77 : vector<1x128xf32>
    %cst_19 = arith.constant 1.000000e+00 : f32
    %79 = vector.broadcast %cst_19 : f32 to vector<1x128xf32>
    %80 = arith.addf %79, %78 : vector<1x128xf32>
    %81 = arith.divf %79, %80 : vector<1x128xf32>
    %82 = arith.select %14, %76, %81 : vector<1x128xi1>, vector<1x128xf32>
    %83 = vector.extract_strided_slice %82 {offsets = [0, 0], sizes = [1, 32], strides = [1, 1]} : vector<1x128xf32> to vector<1x32xf32>
    %84 = vector.extract_strided_slice %82 {offsets = [0, 32], sizes = [1, 32], strides = [1, 1]} : vector<1x128xf32> to vector<1x32xf32>
    %85 = vector.extract_strided_slice %82 {offsets = [0, 64], sizes = [1, 32], strides = [1, 1]} : vector<1x128xf32> to vector<1x32xf32>
    %86 = vector.extract_strided_slice %82 {offsets = [0, 96], sizes = [1, 32], strides = [1, 1]} : vector<1x128xf32> to vector<1x32xf32>
    %87 = arith.mulf %84, %51 : vector<1x32xf32>
    %88 = arith.mulf %83, %85 : vector<1x32xf32>
    %89 = arith.addf %87, %88 : vector<1x32xf32>
    %90 = math.tanh %89 : vector<1x32xf32>
    %91 = arith.mulf %86, %90 : vector<1x32xf32>
    %92 = vector.extract_strided_slice %5 {offsets = [2, 0], sizes = [1, 128], strides = [1, 1]} : vector<8x128xf32> to vector<1x128xf32>
    %cst_20 = arith.constant dense<0.000000e+00> : vector<1x128xf32>
    %93 = tpu.matmul %72, %6, %cst_20 {dimension_numbers = #tpu.dot_dimension_numbers<[1], [0], [0], [1], [0, 0, 1, 1], [], []>} : vector<1x32xf32>, vector<32x128xf32>, vector<1x128xf32> -> vector<1x128xf32>
    %94 = arith.addf %92, %93 : vector<1x128xf32>
    %95 = math.tanh %94 : vector<1x128xf32>
    %96 = arith.negf %94 : vector<1x128xf32>
    %97 = math.exp %96 : vector<1x128xf32>
    %cst_21 = arith.constant 1.000000e+00 : f32
    %98 = vector.broadcast %cst_21 : f32 to vector<1x128xf32>
    %99 = arith.addf %98, %97 : vector<1x128xf32>
    %100 = arith.divf %98, %99 : vector<1x128xf32>
    %101 = arith.select %14, %95, %100 : vector<1x128xi1>, vector<1x128xf32>
    %102 = vector.extract_strided_slice %101 {offsets = [0, 0], sizes = [1, 32], strides = [1, 1]} : vector<1x128xf32> to vector<1x32xf32>
    %103 = vector.extract_strided_slice %101 {offsets = [0, 32], sizes = [1, 32], strides = [1, 1]} : vector<1x128xf32> to vector<1x32xf32>
    %104 = vector.extract_strided_slice %101 {offsets = [0, 64], sizes = [1, 32], strides = [1, 1]} : vector<1x128xf32> to vector<1x32xf32>
    %105 = vector.extract_strided_slice %101 {offsets = [0, 96], sizes = [1, 32], strides = [1, 1]} : vector<1x128xf32> to vector<1x32xf32>
    %106 = arith.mulf %103, %70 : vector<1x32xf32>
    %107 = arith.mulf %102, %104 : vector<1x32xf32>
    %108 = arith.addf %106, %107 : vector<1x32xf32>
    %109 = math.tanh %108 : vector<1x32xf32>
    %110 = arith.mulf %105, %109 : vector<1x32xf32>
    %111 = tpu.concatenate %110, %91 in 1 : vector<1x32xf32>, vector<1x32xf32> -> vector<1x64xf32>
    %cst_22 = arith.constant dense<0.000000e+00> : vector<1x128xf32>
    %112 = tpu.matmul %111, %7, %cst_22 {dimension_numbers = #tpu.dot_dimension_numbers<[1], [0], [0], [1], [0, 0, 1, 1], [], []>} : vector<1x64xf32>, vector<64x128xf32>, vector<1x128xf32> -> vector<1x128xf32>
    %113 = arith.addf %112, %8 : vector<1x128xf32>
    %114 = math.tanh %113 : vector<1x128xf32>
    %115 = arith.negf %113 : vector<1x128xf32>
    %116 = math.exp %115 : vector<1x128xf32>
    %cst_23 = arith.constant 1.000000e+00 : f32
    %117 = vector.broadcast %cst_23 : f32 to vector<1x128xf32>
    %118 = arith.addf %117, %116 : vector<1x128xf32>
    %119 = arith.divf %117, %118 : vector<1x128xf32>
    %120 = arith.select %14, %114, %119 : vector<1x128xi1>, vector<1x128xf32>
    %121 = vector.extract_strided_slice %120 {offsets = [0, 0], sizes = [1, 32], strides = [1, 1]} : vector<1x128xf32> to vector<1x32xf32>
    %122 = vector.extract_strided_slice %120 {offsets = [0, 32], sizes = [1, 32], strides = [1, 1]} : vector<1x128xf32> to vector<1x32xf32>
    %123 = vector.extract_strided_slice %120 {offsets = [0, 64], sizes = [1, 32], strides = [1, 1]} : vector<1x128xf32> to vector<1x32xf32>
    %124 = vector.extract_strided_slice %120 {offsets = [0, 96], sizes = [1, 32], strides = [1, 1]} : vector<1x128xf32> to vector<1x32xf32>
    %125 = arith.mulf %122, %89 : vector<1x32xf32>
    %126 = arith.mulf %121, %123 : vector<1x32xf32>
    %127 = arith.addf %125, %126 : vector<1x32xf32>
    %128 = math.tanh %127 : vector<1x32xf32>
    %129 = arith.mulf %124, %128 : vector<1x32xf32>
    %130 = vector.extract_strided_slice %5 {offsets = [3, 0], sizes = [1, 128], strides = [1, 1]} : vector<8x128xf32> to vector<1x128xf32>
    %cst_24 = arith.constant dense<0.000000e+00> : vector<1x128xf32>
    %131 = tpu.matmul %110, %6, %cst_24 {dimension_numbers = #tpu.dot_dimension_numbers<[1], [0], [0], [1], [0, 0, 1, 1], [], []>} : vector<1x32xf32>, vector<32x128xf32>, vector<1x128xf32> -> vector<1x128xf32>
    %132 = arith.addf %130, %131 : vector<1x128xf32>
    %133 = math.tanh %132 : vector<1x128xf32>
    %134 = arith.negf %132 : vector<1x128xf32>
    %135 = math.exp %134 : vector<1x128xf32>
    %cst_25 = arith.constant 1.000000e+00 : f32
    %136 = vector.broadcast %cst_25 : f32 to vector<1x128xf32>
    %137 = arith.addf %136, %135 : vector<1x128xf32>
    %138 = arith.divf %136, %137 : vector<1x128xf32>
    %139 = arith.select %14, %133, %138 : vector<1x128xi1>, vector<1x128xf32>
    %140 = vector.extract_strided_slice %139 {offsets = [0, 0], sizes = [1, 32], strides = [1, 1]} : vector<1x128xf32> to vector<1x32xf32>
    %141 = vector.extract_strided_slice %139 {offsets = [0, 32], sizes = [1, 32], strides = [1, 1]} : vector<1x128xf32> to vector<1x32xf32>
    %142 = vector.extract_strided_slice %139 {offsets = [0, 64], sizes = [1, 32], strides = [1, 1]} : vector<1x128xf32> to vector<1x32xf32>
    %143 = vector.extract_strided_slice %139 {offsets = [0, 96], sizes = [1, 32], strides = [1, 1]} : vector<1x128xf32> to vector<1x32xf32>
    %144 = arith.mulf %141, %108 : vector<1x32xf32>
    %145 = arith.mulf %140, %142 : vector<1x32xf32>
    %146 = arith.addf %144, %145 : vector<1x32xf32>
    %147 = math.tanh %146 : vector<1x32xf32>
    %148 = arith.mulf %143, %147 : vector<1x32xf32>
    %149 = tpu.concatenate %148, %129 in 1 : vector<1x32xf32>, vector<1x32xf32> -> vector<1x64xf32>
    %cst_26 = arith.constant dense<0.000000e+00> : vector<1x128xf32>
    %150 = tpu.matmul %149, %7, %cst_26 {dimension_numbers = #tpu.dot_dimension_numbers<[1], [0], [0], [1], [0, 0, 1, 1], [], []>} : vector<1x64xf32>, vector<64x128xf32>, vector<1x128xf32> -> vector<1x128xf32>
    %151 = arith.addf %150, %8 : vector<1x128xf32>
    %152 = math.tanh %151 : vector<1x128xf32>
    %153 = arith.negf %151 : vector<1x128xf32>
    %154 = math.exp %153 : vector<1x128xf32>
    %cst_27 = arith.constant 1.000000e+00 : f32
    %155 = vector.broadcast %cst_27 : f32 to vector<1x128xf32>
    %156 = arith.addf %155, %154 : vector<1x128xf32>
    %157 = arith.divf %155, %156 : vector<1x128xf32>
    %158 = arith.select %14, %152, %157 : vector<1x128xi1>, vector<1x128xf32>
    %159 = vector.extract_strided_slice %158 {offsets = [0, 0], sizes = [1, 32], strides = [1, 1]} : vector<1x128xf32> to vector<1x32xf32>
    %160 = vector.extract_strided_slice %158 {offsets = [0, 32], sizes = [1, 32], strides = [1, 1]} : vector<1x128xf32> to vector<1x32xf32>
    %161 = vector.extract_strided_slice %158 {offsets = [0, 64], sizes = [1, 32], strides = [1, 1]} : vector<1x128xf32> to vector<1x32xf32>
    %162 = vector.extract_strided_slice %158 {offsets = [0, 96], sizes = [1, 32], strides = [1, 1]} : vector<1x128xf32> to vector<1x32xf32>
    %163 = arith.mulf %160, %127 : vector<1x32xf32>
    %164 = arith.mulf %159, %161 : vector<1x32xf32>
    %165 = arith.addf %163, %164 : vector<1x32xf32>
    %166 = math.tanh %165 : vector<1x32xf32>
    %167 = arith.mulf %162, %166 : vector<1x32xf32>
    %168 = vector.extract_strided_slice %5 {offsets = [4, 0], sizes = [1, 128], strides = [1, 1]} : vector<8x128xf32> to vector<1x128xf32>
    %cst_28 = arith.constant dense<0.000000e+00> : vector<1x128xf32>
    %169 = tpu.matmul %148, %6, %cst_28 {dimension_numbers = #tpu.dot_dimension_numbers<[1], [0], [0], [1], [0, 0, 1, 1], [], []>} : vector<1x32xf32>, vector<32x128xf32>, vector<1x128xf32> -> vector<1x128xf32>
    %170 = arith.addf %168, %169 : vector<1x128xf32>
    %171 = math.tanh %170 : vector<1x128xf32>
    %172 = arith.negf %170 : vector<1x128xf32>
    %173 = math.exp %172 : vector<1x128xf32>
    %cst_29 = arith.constant 1.000000e+00 : f32
    %174 = vector.broadcast %cst_29 : f32 to vector<1x128xf32>
    %175 = arith.addf %174, %173 : vector<1x128xf32>
    %176 = arith.divf %174, %175 : vector<1x128xf32>
    %177 = arith.select %14, %171, %176 : vector<1x128xi1>, vector<1x128xf32>
    %178 = vector.extract_strided_slice %177 {offsets = [0, 0], sizes = [1, 32], strides = [1, 1]} : vector<1x128xf32> to vector<1x32xf32>
    %179 = vector.extract_strided_slice %177 {offsets = [0, 32], sizes = [1, 32], strides = [1, 1]} : vector<1x128xf32> to vector<1x32xf32>
    %180 = vector.extract_strided_slice %177 {offsets = [0, 64], sizes = [1, 32], strides = [1, 1]} : vector<1x128xf32> to vector<1x32xf32>
    %181 = vector.extract_strided_slice %177 {offsets = [0, 96], sizes = [1, 32], strides = [1, 1]} : vector<1x128xf32> to vector<1x32xf32>
    %182 = arith.mulf %179, %146 : vector<1x32xf32>
    %183 = arith.mulf %178, %180 : vector<1x32xf32>
    %184 = arith.addf %182, %183 : vector<1x32xf32>
    %185 = math.tanh %184 : vector<1x32xf32>
    %186 = arith.mulf %181, %185 : vector<1x32xf32>
    %187 = tpu.concatenate %186, %167 in 1 : vector<1x32xf32>, vector<1x32xf32> -> vector<1x64xf32>
    %cst_30 = arith.constant dense<0.000000e+00> : vector<1x128xf32>
    %188 = tpu.matmul %187, %7, %cst_30 {dimension_numbers = #tpu.dot_dimension_numbers<[1], [0], [0], [1], [0, 0, 1, 1], [], []>} : vector<1x64xf32>, vector<64x128xf32>, vector<1x128xf32> -> vector<1x128xf32>
    %189 = arith.addf %188, %8 : vector<1x128xf32>
    %190 = math.tanh %189 : vector<1x128xf32>
    %191 = arith.negf %189 : vector<1x128xf32>
    %192 = math.exp %191 : vector<1x128xf32>
    %cst_31 = arith.constant 1.000000e+00 : f32
    %193 = vector.broadcast %cst_31 : f32 to vector<1x128xf32>
    %194 = arith.addf %193, %192 : vector<1x128xf32>
    %195 = arith.divf %193, %194 : vector<1x128xf32>
    %196 = arith.select %14, %190, %195 : vector<1x128xi1>, vector<1x128xf32>
    %197 = vector.extract_strided_slice %196 {offsets = [0, 0], sizes = [1, 32], strides = [1, 1]} : vector<1x128xf32> to vector<1x32xf32>
    %198 = vector.extract_strided_slice %196 {offsets = [0, 32], sizes = [1, 32], strides = [1, 1]} : vector<1x128xf32> to vector<1x32xf32>
    %199 = vector.extract_strided_slice %196 {offsets = [0, 64], sizes = [1, 32], strides = [1, 1]} : vector<1x128xf32> to vector<1x32xf32>
    %200 = vector.extract_strided_slice %196 {offsets = [0, 96], sizes = [1, 32], strides = [1, 1]} : vector<1x128xf32> to vector<1x32xf32>
    %201 = arith.mulf %198, %165 : vector<1x32xf32>
    %202 = arith.mulf %197, %199 : vector<1x32xf32>
    %203 = arith.addf %201, %202 : vector<1x32xf32>
    %204 = math.tanh %203 : vector<1x32xf32>
    %205 = arith.mulf %200, %204 : vector<1x32xf32>
    %206 = vector.extract_strided_slice %5 {offsets = [5, 0], sizes = [1, 128], strides = [1, 1]} : vector<8x128xf32> to vector<1x128xf32>
    %cst_32 = arith.constant dense<0.000000e+00> : vector<1x128xf32>
    %207 = tpu.matmul %186, %6, %cst_32 {dimension_numbers = #tpu.dot_dimension_numbers<[1], [0], [0], [1], [0, 0, 1, 1], [], []>} : vector<1x32xf32>, vector<32x128xf32>, vector<1x128xf32> -> vector<1x128xf32>
    %208 = arith.addf %206, %207 : vector<1x128xf32>
    %209 = math.tanh %208 : vector<1x128xf32>
    %210 = arith.negf %208 : vector<1x128xf32>
    %211 = math.exp %210 : vector<1x128xf32>
    %cst_33 = arith.constant 1.000000e+00 : f32
    %212 = vector.broadcast %cst_33 : f32 to vector<1x128xf32>
    %213 = arith.addf %212, %211 : vector<1x128xf32>
    %214 = arith.divf %212, %213 : vector<1x128xf32>
    %215 = arith.select %14, %209, %214 : vector<1x128xi1>, vector<1x128xf32>
    %216 = vector.extract_strided_slice %215 {offsets = [0, 0], sizes = [1, 32], strides = [1, 1]} : vector<1x128xf32> to vector<1x32xf32>
    %217 = vector.extract_strided_slice %215 {offsets = [0, 32], sizes = [1, 32], strides = [1, 1]} : vector<1x128xf32> to vector<1x32xf32>
    %218 = vector.extract_strided_slice %215 {offsets = [0, 64], sizes = [1, 32], strides = [1, 1]} : vector<1x128xf32> to vector<1x32xf32>
    %219 = vector.extract_strided_slice %215 {offsets = [0, 96], sizes = [1, 32], strides = [1, 1]} : vector<1x128xf32> to vector<1x32xf32>
    %220 = arith.mulf %217, %184 : vector<1x32xf32>
    %221 = arith.mulf %216, %218 : vector<1x32xf32>
    %222 = arith.addf %220, %221 : vector<1x32xf32>
    %223 = math.tanh %222 : vector<1x32xf32>
    %224 = arith.mulf %219, %223 : vector<1x32xf32>
    %225 = tpu.concatenate %224, %205 in 1 : vector<1x32xf32>, vector<1x32xf32> -> vector<1x64xf32>
    %cst_34 = arith.constant dense<0.000000e+00> : vector<1x128xf32>
    %226 = tpu.matmul %225, %7, %cst_34 {dimension_numbers = #tpu.dot_dimension_numbers<[1], [0], [0], [1], [0, 0, 1, 1], [], []>} : vector<1x64xf32>, vector<64x128xf32>, vector<1x128xf32> -> vector<1x128xf32>
    %227 = arith.addf %226, %8 : vector<1x128xf32>
    %228 = math.tanh %227 : vector<1x128xf32>
    %229 = arith.negf %227 : vector<1x128xf32>
    %230 = math.exp %229 : vector<1x128xf32>
    %cst_35 = arith.constant 1.000000e+00 : f32
    %231 = vector.broadcast %cst_35 : f32 to vector<1x128xf32>
    %232 = arith.addf %231, %230 : vector<1x128xf32>
    %233 = arith.divf %231, %232 : vector<1x128xf32>
    %234 = arith.select %14, %228, %233 : vector<1x128xi1>, vector<1x128xf32>
    %235 = vector.extract_strided_slice %234 {offsets = [0, 0], sizes = [1, 32], strides = [1, 1]} : vector<1x128xf32> to vector<1x32xf32>
    %236 = vector.extract_strided_slice %234 {offsets = [0, 32], sizes = [1, 32], strides = [1, 1]} : vector<1x128xf32> to vector<1x32xf32>
    %237 = vector.extract_strided_slice %234 {offsets = [0, 64], sizes = [1, 32], strides = [1, 1]} : vector<1x128xf32> to vector<1x32xf32>
    %238 = vector.extract_strided_slice %234 {offsets = [0, 96], sizes = [1, 32], strides = [1, 1]} : vector<1x128xf32> to vector<1x32xf32>
    %239 = arith.mulf %236, %203 : vector<1x32xf32>
    %240 = arith.mulf %235, %237 : vector<1x32xf32>
    %241 = arith.addf %239, %240 : vector<1x32xf32>
    %242 = math.tanh %241 : vector<1x32xf32>
    %243 = arith.mulf %238, %242 : vector<1x32xf32>
    %244 = vector.extract_strided_slice %5 {offsets = [6, 0], sizes = [1, 128], strides = [1, 1]} : vector<8x128xf32> to vector<1x128xf32>
    %cst_36 = arith.constant dense<0.000000e+00> : vector<1x128xf32>
    %245 = tpu.matmul %224, %6, %cst_36 {dimension_numbers = #tpu.dot_dimension_numbers<[1], [0], [0], [1], [0, 0, 1, 1], [], []>} : vector<1x32xf32>, vector<32x128xf32>, vector<1x128xf32> -> vector<1x128xf32>
    %246 = arith.addf %244, %245 : vector<1x128xf32>
    %247 = math.tanh %246 : vector<1x128xf32>
    %248 = arith.negf %246 : vector<1x128xf32>
    %249 = math.exp %248 : vector<1x128xf32>
    %cst_37 = arith.constant 1.000000e+00 : f32
    %250 = vector.broadcast %cst_37 : f32 to vector<1x128xf32>
    %251 = arith.addf %250, %249 : vector<1x128xf32>
    %252 = arith.divf %250, %251 : vector<1x128xf32>
    %253 = arith.select %14, %247, %252 : vector<1x128xi1>, vector<1x128xf32>
    %254 = vector.extract_strided_slice %253 {offsets = [0, 0], sizes = [1, 32], strides = [1, 1]} : vector<1x128xf32> to vector<1x32xf32>
    %255 = vector.extract_strided_slice %253 {offsets = [0, 32], sizes = [1, 32], strides = [1, 1]} : vector<1x128xf32> to vector<1x32xf32>
    %256 = vector.extract_strided_slice %253 {offsets = [0, 64], sizes = [1, 32], strides = [1, 1]} : vector<1x128xf32> to vector<1x32xf32>
    %257 = vector.extract_strided_slice %253 {offsets = [0, 96], sizes = [1, 32], strides = [1, 1]} : vector<1x128xf32> to vector<1x32xf32>
    %258 = arith.mulf %255, %222 : vector<1x32xf32>
    %259 = arith.mulf %254, %256 : vector<1x32xf32>
    %260 = arith.addf %258, %259 : vector<1x32xf32>
    %261 = math.tanh %260 : vector<1x32xf32>
    %262 = arith.mulf %257, %261 : vector<1x32xf32>
    %263 = tpu.concatenate %262, %243 in 1 : vector<1x32xf32>, vector<1x32xf32> -> vector<1x64xf32>
    %cst_38 = arith.constant dense<0.000000e+00> : vector<1x128xf32>
    %264 = tpu.matmul %263, %7, %cst_38 {dimension_numbers = #tpu.dot_dimension_numbers<[1], [0], [0], [1], [0, 0, 1, 1], [], []>} : vector<1x64xf32>, vector<64x128xf32>, vector<1x128xf32> -> vector<1x128xf32>
    %265 = arith.addf %264, %8 : vector<1x128xf32>
    %266 = math.tanh %265 : vector<1x128xf32>
    %267 = arith.negf %265 : vector<1x128xf32>
    %268 = math.exp %267 : vector<1x128xf32>
    %cst_39 = arith.constant 1.000000e+00 : f32
    %269 = vector.broadcast %cst_39 : f32 to vector<1x128xf32>
    %270 = arith.addf %269, %268 : vector<1x128xf32>
    %271 = arith.divf %269, %270 : vector<1x128xf32>
    %272 = arith.select %14, %266, %271 : vector<1x128xi1>, vector<1x128xf32>
    %273 = vector.extract_strided_slice %272 {offsets = [0, 0], sizes = [1, 32], strides = [1, 1]} : vector<1x128xf32> to vector<1x32xf32>
    %274 = vector.extract_strided_slice %272 {offsets = [0, 32], sizes = [1, 32], strides = [1, 1]} : vector<1x128xf32> to vector<1x32xf32>
    %275 = vector.extract_strided_slice %272 {offsets = [0, 64], sizes = [1, 32], strides = [1, 1]} : vector<1x128xf32> to vector<1x32xf32>
    %276 = vector.extract_strided_slice %272 {offsets = [0, 96], sizes = [1, 32], strides = [1, 1]} : vector<1x128xf32> to vector<1x32xf32>
    %277 = arith.mulf %274, %241 : vector<1x32xf32>
    %278 = arith.mulf %273, %275 : vector<1x32xf32>
    %279 = arith.addf %277, %278 : vector<1x32xf32>
    %280 = math.tanh %279 : vector<1x32xf32>
    %281 = arith.mulf %276, %280 : vector<1x32xf32>
    %282 = vector.extract_strided_slice %5 {offsets = [7, 0], sizes = [1, 128], strides = [1, 1]} : vector<8x128xf32> to vector<1x128xf32>
    %cst_40 = arith.constant dense<0.000000e+00> : vector<1x128xf32>
    %283 = tpu.matmul %262, %6, %cst_40 {dimension_numbers = #tpu.dot_dimension_numbers<[1], [0], [0], [1], [0, 0, 1, 1], [], []>} : vector<1x32xf32>, vector<32x128xf32>, vector<1x128xf32> -> vector<1x128xf32>
    %284 = arith.addf %282, %283 : vector<1x128xf32>
    %285 = math.tanh %284 : vector<1x128xf32>
    %286 = arith.negf %284 : vector<1x128xf32>
    %287 = math.exp %286 : vector<1x128xf32>
    %cst_41 = arith.constant 1.000000e+00 : f32
    %288 = vector.broadcast %cst_41 : f32 to vector<1x128xf32>
    %289 = arith.addf %288, %287 : vector<1x128xf32>
    %290 = arith.divf %288, %289 : vector<1x128xf32>
    %291 = arith.select %14, %285, %290 : vector<1x128xi1>, vector<1x128xf32>
    %292 = vector.extract_strided_slice %291 {offsets = [0, 0], sizes = [1, 32], strides = [1, 1]} : vector<1x128xf32> to vector<1x32xf32>
    %293 = vector.extract_strided_slice %291 {offsets = [0, 32], sizes = [1, 32], strides = [1, 1]} : vector<1x128xf32> to vector<1x32xf32>
    %294 = vector.extract_strided_slice %291 {offsets = [0, 64], sizes = [1, 32], strides = [1, 1]} : vector<1x128xf32> to vector<1x32xf32>
    %295 = vector.extract_strided_slice %291 {offsets = [0, 96], sizes = [1, 32], strides = [1, 1]} : vector<1x128xf32> to vector<1x32xf32>
    %296 = arith.mulf %293, %260 : vector<1x32xf32>
    %297 = arith.mulf %292, %294 : vector<1x32xf32>
    %298 = arith.addf %296, %297 : vector<1x32xf32>
    %299 = math.tanh %298 : vector<1x32xf32>
    %300 = arith.mulf %295, %299 : vector<1x32xf32>
    %301 = tpu.concatenate %300, %281 in 1 : vector<1x32xf32>, vector<1x32xf32> -> vector<1x64xf32>
    %cst_42 = arith.constant dense<0.000000e+00> : vector<1x128xf32>
    %302 = tpu.matmul %301, %7, %cst_42 {dimension_numbers = #tpu.dot_dimension_numbers<[1], [0], [0], [1], [0, 0, 1, 1], [], []>} : vector<1x64xf32>, vector<64x128xf32>, vector<1x128xf32> -> vector<1x128xf32>
    %303 = arith.addf %302, %8 : vector<1x128xf32>
    %304 = math.tanh %303 : vector<1x128xf32>
    %305 = arith.negf %303 : vector<1x128xf32>
    %306 = math.exp %305 : vector<1x128xf32>
    %cst_43 = arith.constant 1.000000e+00 : f32
    %307 = vector.broadcast %cst_43 : f32 to vector<1x128xf32>
    %308 = arith.addf %307, %306 : vector<1x128xf32>
    %309 = arith.divf %307, %308 : vector<1x128xf32>
    %310 = arith.select %14, %304, %309 : vector<1x128xi1>, vector<1x128xf32>
    %311 = vector.extract_strided_slice %310 {offsets = [0, 0], sizes = [1, 32], strides = [1, 1]} : vector<1x128xf32> to vector<1x32xf32>
    %312 = vector.extract_strided_slice %310 {offsets = [0, 32], sizes = [1, 32], strides = [1, 1]} : vector<1x128xf32> to vector<1x32xf32>
    %313 = vector.extract_strided_slice %310 {offsets = [0, 64], sizes = [1, 32], strides = [1, 1]} : vector<1x128xf32> to vector<1x32xf32>
    %314 = vector.extract_strided_slice %310 {offsets = [0, 96], sizes = [1, 32], strides = [1, 1]} : vector<1x128xf32> to vector<1x32xf32>
    %315 = arith.mulf %312, %279 : vector<1x32xf32>
    %316 = arith.mulf %311, %313 : vector<1x32xf32>
    %317 = arith.addf %315, %316 : vector<1x32xf32>
    %318 = math.tanh %317 : vector<1x32xf32>
    %319 = arith.mulf %314, %318 : vector<1x32xf32>
    %320 = tpu.concatenate %53, %91, %129, %167, %205, %243, %281, %319 in 0 : vector<1x32xf32>, vector<1x32xf32>, vector<1x32xf32>, vector<1x32xf32>, vector<1x32xf32>, vector<1x32xf32>, vector<1x32xf32>, vector<1x32xf32> -> vector<8x32xf32>
    %c0_44 = arith.constant 0 : index
    %c0_45 = arith.constant 0 : index
    %321 = vector.load %arg7[%c0_44, %c0_45] : memref<32x128xf32, #tpu.memory_space<vmem>>, vector<32x128xf32>
    %cst_46 = arith.constant dense<0.000000e+00> : vector<8x128xf32>
    %322 = tpu.matmul %320, %321, %cst_46 {dimension_numbers = #tpu.dot_dimension_numbers<[1], [0], [0], [1], [0, 0, 1, 1], [], []>} : vector<8x32xf32>, vector<32x128xf32>, vector<8x128xf32> -> vector<8x128xf32>
    %c0_47 = arith.constant 0 : index
    %c0_48 = arith.constant 0 : index
    %323 = vector.load %arg8[%c0_47, %c0_48] : memref<1x128xf32, #tpu.memory_space<vmem>>, vector<1x128xf32>
    %324 = vector.broadcast %323 : vector<1x128xf32> to vector<8x128xf32>
    %325 = arith.addf %322, %324 : vector<8x128xf32>
    %c0_49 = arith.constant 0 : index
    %c0_50 = arith.constant 0 : index
    %326 = vector.load %arg9[%c0_49, %c0_50] : memref<8x128xf32, #tpu.memory_space<vmem>>, vector<8x128xf32>
    tpu.vector_store %arg9[%c0_49, %c0_50], %325 {strides = array<i32>} : memref<8x128xf32, #tpu.memory_space<vmem>>, vector<8x128xf32>,
    return
  }
  func.func @transform_0(%arg0: i32) -> (i32, i32) {
    %c0_i32 = arith.constant 0 : i32
    %c0_i32_0 = arith.constant 0 : i32
    %c0_i32_1 = arith.constant 0 : i32
    return %c0_i32, %c0_i32_0 : i32, i32
  }
  func.func @transform_1(%arg0: i32) -> (i32, i32) {
    %c0_i32 = arith.constant 0 : i32
    %c0_i32_0 = arith.constant 0 : i32
    %c0_i32_1 = arith.constant 0 : i32
    return %c0_i32, %c0_i32_0 : i32, i32
  }
  func.func @transform_2(%arg0: i32) -> (i32, i32) {
    %c0_i32 = arith.constant 0 : i32
    %c0_i32_0 = arith.constant 0 : i32
    %c0_i32_1 = arith.constant 0 : i32
    return %c0_i32, %c0_i32_0 : i32, i32
  }
  func.func @transform_3(%arg0: i32) -> (i32, i32) {
    %c0_i32 = arith.constant 0 : i32
    %c0_i32_0 = arith.constant 0 : i32
    %c0_i32_1 = arith.constant 0 : i32
    return %c0_i32, %c0_i32_0 : i32, i32
  }
  func.func @transform_4(%arg0: i32) -> (i32, i32) {
    %c0_i32 = arith.constant 0 : i32
    %c0_i32_0 = arith.constant 0 : i32
    %c0_i32_1 = arith.constant 0 : i32
    return %c0_i32, %c0_i32_0 : i32, i32
  }
  func.func @transform_5(%arg0: i32) -> (i32, i32) {
    %c0_i32 = arith.constant 0 : i32
    %c0_i32_0 = arith.constant 0 : i32
    %c0_i32_1 = arith.constant 0 : i32
    return %c0_i32, %c0_i32_0 : i32, i32
  }
  func.func @transform_6(%arg0: i32) -> (i32, i32) {
    %c0_i32 = arith.constant 0 : i32
    %c0_i32_0 = arith.constant 0 : i32
    %c0_i32_1 = arith.constant 0 : i32
    return %c0_i32, %c0_i32_0 : i32, i32
  }
  func.func @transform_7(%arg0: i32) -> (i32, i32) {
    %c0_i32 = arith.constant 0 : i32
    %c0_i32_0 = arith.constant 0 : i32
    %c0_i32_1 = arith.constant 0 : i32
    return %c0_i32, %c0_i32_0 : i32, i32
  }
  func.func @transform_8(%arg0: i32) -> (i32, i32) {
    %c0_i32 = arith.constant 0 : i32
    %c0_i32_0 = arith.constant 0 : i32
    %c0_i32_1 = arith.constant 0 : i32
    return %c0_i32, %c0_i32_0 : i32, i32
  }
}

</mosaic_0001>

<bundles_post_ra>
// kernel: tpu_custom_call.1
= control target key start
LH: loop header
LB: loop body
LE: loop exit
PB: predicated region body
PF: predicated region fallthrough
CT: control target
= control target key end

     0   :  { %13 = vsyncpa [#allocation3], 0  ;;  %s3427_s0 = inlined_call_operand.hbm [shape: f32[8,32], index: 0, kind: input, shape index: {}]   ;;  %s3428_s1 = inlined_call_operand.hbm [shape: f32[32,128], index: 1, kind: input, shape index: {}]   ;;  %s3429_s2 = inlined_call_operand.hbm [shape: f32[32,128], index: 2, kind: input, shape index: {}]   ;;  %s3430_s3 = inlined_call_operand.vmem [shape: f32[1,128], index: 3, kind: input, shape index: {}]   ;;  %s3431_s4 = inlined_call_operand.hbm [shape: f32[64,128], index: 4, kind: input, shape index: {}]   ;;  %s3432_s5 = inlined_call_operand.vmem [shape: f32[1,128], index: 5, kind: input, shape index: {}]   ;;  %s3433_s6 = inlined_call_operand.hbm [shape: f32[32,128], index: 6, kind: input, shape index: {}]   ;;  %s3434_s7 = inlined_call_operand.vmem [shape: f32[1,128], index: 7, kind: input, shape index: {}]   ;;  %s3435_s8 = inlined_call_operand.hbm [shape: f32[8,128], index: 8, kind: output, shape index: {}]  }
   0x1   :  { %14 = vsyncpa [#allocation6], 0 }
   0x2   :  { %15 = vsyncpa [#allocation9], 0 }
   0x3   :  { %16 = vsyncpa [#allocation4], 0  ;;  %s2902_s27 = smov [#allocation5]   ;;  %s2762_s9 = scalar_lea.hbm %s3428_s1, 512 }
   0x4   :  { %s32_s28 = sshll.u32 %s2902_s27, 4  ;;  %p2763_p0 = scmp.ne.s32.totalorder %s3428_s1, %s2762_s9  ;;  %s33_s28 = int_to_ptr.vmem [resolvable:$true] %s32_s28 }
   0x5   :  { %p2766_p1 = scmp.lt.u32.totalorder %s2762_s9, %s3428_s1 }
   0x7   :  { %p2768_p2 = pnand %p2766_p1, %p2763_p0 }
   0x9   :  { %2771 = shalt.err (!%p2768_p2)
}
   0xa   :  { %s2772_s14 = scalar_lea.vmem %s33_s28, 512  ;;  %p2777_p4 = scmp.lt.s32.totalorder %s33_s28, %s33_s28 }
   0xb   :  { %p2773_p3 = scmp.ne.s32.totalorder %s33_s28, %s2772_s14  ;;  %p2778_p5 = scmp.lt.s32.totalorder %s2772_s14, %s2772_s14 }
   0xd   :  { %p2779_p6 = por %p2778_p5, %p2777_p4 }
   0xf   :  { %p2780_p7 = pnand %p2779_p6, %p2773_p3 }
  0x11   :  { %2783 = shalt.err (!%p2780_p7)
}
  0x12   :  { %s2903_s15 = smov 128   ;;  %s2904_s16 = smov 8  }
  0x13   :  { %38 = dma.hbm_to_vmem [thread:$0]  %s3428_s1, 512, %s33_s28, [#allocation6], %s2903_s15, %s2903_s15, %s2904_s16  }
  0x14   :  { %s2905_s19 = smov [#allocation8]   ;;  %s2906_s21 = smov [#allocation2]  }
  0x15   :  { %s58_s20 = sshll.u32 %s2905_s19, 4  ;;  %s23_s22 = sshll.u32 %s2906_s21, 4  ;;  %s59_s20 = int_to_ptr.vmem [resolvable:$true] %s58_s20  ;;  %s24_s22 = int_to_ptr.vmem [resolvable:$true] %s23_s22 }
  0x16   :  { %s2784_s25 = scalar_lea.hbm %s3431_s4, 1024 }
  0x17   :  { %p2785_p8 = scmp.ne.s32.totalorder %s3431_s4, %s2784_s25  ;;  %p2788_p9 = scmp.lt.u32.totalorder %s2784_s25, %s3431_s4 }
  0x19   :  { %p2790_p10 = pnand %p2788_p9, %p2785_p8 }
  0x1b   :  { %2793 = shalt.err (!%p2790_p10)
}
  0x1c   :  { %s2794_s1 = scalar_lea.vmem %s59_s20, 1024  ;;  %p2799_p12 = scmp.lt.s32.totalorder %s59_s20, %s59_s20 }
  0x1d   :  { %p2795_p11 = scmp.ne.s32.totalorder %s59_s20, %s2794_s1  ;;  %p2800_p13 = scmp.lt.s32.totalorder %s2794_s1, %s2794_s1 }
  0x1f   :  { %p2801_p0 = por %p2800_p13, %p2799_p12 }
  0x21   :  { %p2802_p1 = pnand %p2801_p0, %p2795_p11 }
  0x23   :  { %2805 = shalt.err (!%p2802_p1)
}
  0x24   :  { %64 = dma.hbm_to_vmem [thread:$0]  %s3431_s4, 1024, %s59_s20, [#allocation9], %s2903_s15, %s2903_s15, %s2904_s16  }
  0x25   :  { %s2806_s12 = scalar_lea.hbm %s3427_s0, 128 }
  0x26   :  { %p2807_p2 = scmp.ne.s32.totalorder %s3427_s0, %s2806_s12  ;;  %p2810_p3 = scmp.lt.u32.totalorder %s2806_s12, %s3427_s0 }
  0x28   :  { %p2812_p4 = pnand %p2810_p3, %p2807_p2 }
  0x2a   :  { %2815 = shalt.err (!%p2812_p4)
}
  0x2b   :  { %s2816_s19 = scalar_lea.vmem %s24_s22, 128  ;;  %p2821_p6 = scmp.lt.s32.totalorder %s24_s22, %s24_s22 }
  0x2c   :  { %p2817_p5 = scmp.ne.s32.totalorder %s24_s22, %s2816_s19  ;;  %p2822_p7 = scmp.lt.s32.totalorder %s2816_s19, %s2816_s19 }
  0x2e   :  { %p2823_p8 = por %p2822_p7, %p2821_p6 }
  0x30   :  { %p2824_p9 = pnand %p2823_p8, %p2817_p5 }
  0x32   :  { %2827 = shalt.err (!%p2824_p9)
}
  0x33   :  { %26 = dma.hbm_to_vmem [thread:$0]  %s3427_s0, 128, %s24_s22, [#allocation3]  }
  0x34   :  { %s2907_s21 = smov [#allocation7]   ;;  %s2908_s24 = smov [#allocation10]  }
  0x35   :  { %s44_s23 = sshll.u32 %s2907_s21, 4  ;;  %s72_s25 = sshll.u32 %s2908_s24, 4  ;;  %s45_s23 = int_to_ptr.vmem [resolvable:$true] %s44_s23  ;;  %s73_s25 = int_to_ptr.vmem [resolvable:$true] %s72_s25 }
  0x36   :  { %s2828_s29 = scalar_lea.hbm %s3429_s2, 512 }
  0x37   :  { %p2829_p10 = scmp.ne.s32.totalorder %s3429_s2, %s2828_s29  ;;  %p2832_p11 = scmp.lt.u32.totalorder %s2828_s29, %s3429_s2 }
  0x39   :  { %p2834_p12 = pnand %p2832_p11, %p2829_p10 }
  0x3b   :  { %2837 = shalt.err (!%p2834_p12)
}
  0x3c   :  { %s2838_s0 = scalar_lea.vmem %s45_s23, 512  ;;  %p2843_p0 = scmp.lt.s32.totalorder %s45_s23, %s45_s23 }
  0x3d   :  { %p2839_p13 = scmp.ne.s32.totalorder %s45_s23, %s2838_s0  ;;  %p2844_p1 = scmp.lt.s32.totalorder %s2838_s0, %s2838_s0 }
  0x3f   :  { %p2845_p2 = por %p2844_p1, %p2843_p0 }
  0x41   :  { %p2846_p3 = pnand %p2845_p2, %p2839_p13 }
  0x43   :  { %2849 = shalt.err (!%p2846_p3)
}
  0x44   :  { %50 = dma.hbm_to_vmem [thread:$0]  %s3429_s2, 512, %s45_s23, [#allocation6], %s2903_s15, %s2903_s15, %s2904_s16  }
  0x45   :  { %s2850_s13 = scalar_lea.hbm %s3433_s6, 512 }
  0x46   :  { %p2851_p4 = scmp.ne.s32.totalorder %s3433_s6, %s2850_s13  ;;  %p2854_p5 = scmp.lt.u32.totalorder %s2850_s13, %s3433_s6 }
  0x48   :  { %p2856_p6 = pnand %p2854_p5, %p2851_p4 }
  0x4a   :  { %2859 = shalt.err (!%p2856_p6)
}
  0x4b   :  { %s2860_s4 = scalar_lea.vmem %s73_s25, 512  ;;  %p2865_p8 = scmp.lt.s32.totalorder %s73_s25, %s73_s25 }
  0x4c   :  { %p2861_p7 = scmp.ne.s32.totalorder %s73_s25, %s2860_s4  ;;  %p2866_p9 = scmp.lt.s32.totalorder %s2860_s4, %s2860_s4 }
  0x4e   :  { %p2867_p10 = por %p2866_p9, %p2865_p8 }
  0x50   :  { %p2868_p11 = pnand %p2867_p10, %p2861_p7 }
  0x52   :  { %2871 = shalt.err (!%p2868_p11)
}
  0x53   :  { %78 = dma.hbm_to_vmem [thread:$0]  %s3433_s6, 512, %s73_s25, [#allocation9], %s2903_s15, %s2903_s15, %s2904_s16  }
  0x54   :  { %2894 = dma.done.wait [#allocation3], 128  }
  0x55   :  { %2895 = vsyncadd [#allocation3], 4294967168 }
  0x56   :  { %2896 = dma.done.wait [#allocation6], 1024  }
  0x57   :  { %2897 = vsyncadd [#allocation6], 4294966272 }
  0x58   :  { %2898 = dma.done.wait [#allocation9], 1536  }
  0x59   :  { %2899 = vsyncadd [#allocation9], 4294965760  ;;  %v2909_v0 = vmov 0.0|0.0   ;;  %vm2910_vm0 = vmmov 0   ;;  %v2911_v1 = vmov 0.0   ;;  %v97_v2 = vld [vmem:[#allocation5] sm:$0xff]  ;;  %v195_v24 = vlaneseq }
  0x5a   :  { %2464 = vmatprep.subr.bf16.mxu0 %v2909_v0  ;;  %2470 = vmatprep.subr.bf16.mxu1 %v2909_v0  ;;  %v98_v3 = vld [vmem:[#allocation5 + $0x8] sm:$0xff]  ;;  %v182_v4 = vld [vmem:[#allocation7] sm:$0xff]  ;;  %v99_v7 = vld [vmem:[#allocation5 + $0x10] sm:$0xff]  ;;  %vm108_vm1 = vcmask 261120   ;;  %s2913_s16 = smov 32   ;;  %vm304_vm5 = vcmask 523264  }
  0x5b   :  { %2210 = vmatprep.mubr.msk.f32.mxu0 %vm2910_vm0, %v2911_v1  ;;  %2221 = vmatprep.mubr.msk.f32.mxu1 %vm2910_vm0, %v2911_v1  ;;  %v2465_v5 = vpack.c.bf16 %v98_v3, %v97_v2  ;;  %v183_v6 = vld [vmem:[#allocation7 + $0x8] sm:$0xff]  ;;  %v100_v8 = vld [vmem:[#allocation5 + $0x18] sm:$0xff]  ;;  %v184_v10 = vld [vmem:[#allocation7 + $0x10] sm:$0xff]  ;;  %v196_v26 = vand.u32 127, %v195_v24  ;;  %vm1927_vm6 = vcmask 1040384   ;;  %vm1929_vm7 = vcmask 1041408  }
  0x5c   :  { %v3038_v9 = vpack.c.bf16 %v183_v6, %v182_v4  ;;  %v185_v11 = vld [vmem:[#allocation7 + $0x18] sm:$0xff]  ;;  %v2468_v12 = vpack.c.bf16 %v100_v8, %v99_v7  ;;  %v186_v36 = vld [vmem:[#allocation8] sm:$0xff]  ;;  %v187_v37 = vld [vmem:[#allocation8 + $0x8] sm:$0xff]  ;;  %vm1931_vm8 = vcmask 1042432   ;;  %vm1933_vm9 = vcmask 1043456   ;;  %s2914_s27 = smov [#allocation11]  }
  0x5d   :  { %2466 = vmatpush3.bf16.msra.mxu0 %v2465_v5  ;;  %v3042_v13 = vpack.c.bf16 %v185_v11, %v184_v10  ;;  %v96_v14 = vld [vmem:[#allocation2] sm:$0xff]  ;;  %vm197_vm2 = vcmp.ge.s32.totalorder %v196_v26, 64  ;;  %vm198_vm3 = vcmp.lt.s32.totalorder %v196_v26, 96  ;;  %v188_v38 = vld [vmem:[#allocation8 + $0x10] sm:$0xff]  ;;  %v3075_v39 = vpack.c.bf16 %v187_v37, %v186_v36  ;;  %v190_v42 = vld [vmem:[#allocation8 + $0x20] sm:$0xff]  ;;  %s2034_s29 = sshll.u32 %s2914_s27, 4  ;;  %s2035_s29 = int_to_ptr.vmem [resolvable:$true] %s2034_s29 }
  0x5e   :  { %2472 = vmatpush3.bf16.msra.mxu1 %v3038_v9  ;;  %2467 = vmatprep.subr.bf16.mxu0 %v2909_v0  ;;  %v2045_v15 = vld [vmem:[%s3430_s3] ss:$0 sm:$0xff]  ;;  %vm3064_vm4 = vmand %vm197_vm2, %vm198_vm3  ;;  %s2912_s3 = smov 64   ;;  %v191_v43 = vld [vmem:[#allocation8 + $0x28] sm:$0xff]  ;;  %vm1935_vm10 = vcmask 1044480   ;;  %vm1937_vm11 = vcmask 1045504   ;;  %p2877_p13 = scmp.lt.s32.totalorder %s2035_s29, %s2035_s29 }
  0x5f   :  { %2473 = vmatprep.subr.bf16.mxu1 %v2909_v0  ;;  %v189_v40 = vld [vmem:[#allocation8 + $0x18] sm:$0xff]  ;;  %v3082_v44 = vpack.c.bf16 %v191_v43, %v190_v42  ;;  %v192_v45 = vld [vmem:[#allocation8 + $0x30] sm:$0xff]  ;;  %vm1939_vm12 = vcmask 1046528   ;;  %s2872_s30 = scalar_lea.vmem %s2035_s29, 128 }
  0x60   :  { %v3078_v41 = vpack.c.bf16 %v189_v40, %v188_v38  ;;  %v193_v46 = vld [vmem:[#allocation8 + $0x38] sm:$0xff]  ;;  %p2873_p12 = scmp.ne.s32.totalorder %s2035_s29, %s2872_s30  ;;  %p2878_p0 = scmp.lt.s32.totalorder %s2872_s30, %s2872_s30 }
  0x61   :  { %2469 = vmatpush3.bf16.msra.mxu0 %v2468_v12  ;;  %v3087_v48 = vpack.c.bf16 %v193_v46, %v192_v45  ;;  %v3115_v53 = vld [vmem:[%s3432_s5] sm:$0x1] }
  0x62   :  { %2475 = vmatpush3.bf16.msra.mxu1 %v3042_v13  ;;  %2476 = vmatprep.subr.bf16.mxu0 %v2909_v0  ;;  %p2879_p1 = por %p2878_p0, %p2877_p13 }
  0x63   :  { %2488 = vmatprep.subr.bf16.mxu1 %v2909_v0 }
  0x64   :  { %2211 = vmatmul.mubr.msk.f32.vlgmr.msra.gmra.mrb[0].mxu0 %vm108_vm1, %v96_v14  ;;  %p2880_p2 = pnand %p2879_p1, %p2873_p12 }
  0x65   :  { %2222 = vmatmul.mubr.f32.vlgmr.msra.gmra.mrb[0].mxu1 %v2911_v1  ;;  %2240 = vmatprep.mubr.msk.f32.mxu0 %vm2910_vm0, %v2911_v1 }
  0x66   :  { %2490 = vmatpush3.bf16.msra.mxu1 %v3038_v9  ;;  %2251 = vmatprep.mubr.msk.f32.mxu1 %vm2910_vm0, %v2911_v1 }
  0x67   :  { %2491 = vmatprep.subr.bf16.mxu1 %v2909_v0  ;;  %2478 = vmatpush3.bf16.msra.mxu0 %v3075_v39 }
  0x68   :  { %2479 = vmatprep.subr.bf16.mxu0 %v2909_v0 }
  0x6a   :  { %2493 = vmatpush3.bf16.msra.mxu1 %v3042_v13 }
  0x6b   :  { %2494 = vmatprep.subr.bf16.mxu1 %v2909_v0  ;;  %2481 = vmatpush3.bf16.msra.mxu0 %v3078_v41 }
  0x6c   :  { %2482 = vmatprep.subr.bf16.mxu0 %v2909_v0 }
  0x6f   :  { %2484 = vmatpush3.bf16.msra.mxu0 %v3082_v44 }
  0x70   :  { %2485 = vmatprep.subr.bf16.mxu0 %v2909_v0 }
  0x73   :  { %2487 = vmatpush3.bf16.msra.mxu0 %v3087_v48 }
  0x74   :  { %2506 = vmatprep.subr.bf16.mxu0 %v2909_v0 }
 0x137   :  { %v178_v16 = vpop.f32.mrb[0].mxu0 }
 0x138   :  { %v3061_v17 = vadd.f32 %v2045_v15, %v178_v16  ;;  %v2212_v18 = vpop.f32.mrb[1].mxu0  ;;  %v269_v19 = vpop.f32.mrb[0].mxu1 }
 0x139   :  { %v2223_v20 = vpop.f32.mrb[1].mxu1 }
 0x13a   :  { %v273_v21 = vadd.f32 %v269_v19, %v3061_v17 }
 0x13c   :  { %v2047_v22 = vmul.f32 -1.442695, %v273_v21 }
 0x13e   :  { %2633 = vpow2.f32 %v2047_v22 }
 0x13f   :  { %2635 = vtanh.f32 %v273_v21 }
 0x148   :  { %v2634_v23 = vpop.eup %2633 }
 0x149   :  { %v278_v25 = vadd.f32 1.0, %v2634_v23  ;;  %v2636_v28 = vpop.eup %2635 }
 0x14b   :  { %2637 = vrcp.f32 %v278_v25 }
 0x155   :  { %v2638_v29 = vpop.eup %2637 }
 0x156   :  { %v281_v30 = vsel %vm3064_vm4, %v2636_v28, %v2638_v29 }
 0x157   :  { %284 = vrot.lane.b32.xlu0 %v281_v30, %s2912_s3  ;;  %v282_v33 = vmul.f32 0.0, %v281_v30 }
 0x1c9   :  { %v285_v31 = vpop.permute.xlu0 %284 }
 0x1ca   :  { %v287_v32 = vmul.f32 %v285_v31, %v281_v30 }
 0x1cc   :  { %289 = vrot.lane.b32.xlu0 %v287_v32, %s2913_s16 }
 0x23e   :  { %v290_v34 = vpop.permute.xlu0 %289 }
 0x23f   :  { %v3072_v35 = vadd.f32 %v290_v34, %v282_v33 }
 0x241   :  { %2639 = vtanh.f32 %v3072_v35  ;;  %v488_v18 = vrot.slane %v3072_v35, 7 }
 0x24b   :  { %v2640_v47 = vpop.eup %2639 }
 0x24c   :  { %295 = vrot.lane.b32.xlu1 %v2640_v47, %s2912_s3 }
 0x2be   :  { %v296_v49 = vpop.permute.xlu1 %295 }
 0x2bf   :  { %v298_v50 = vmul.f32 %v296_v49, %v281_v30 }
 0x2c1   :  { %300 = vrot.lane.b32.xlu1 %v298_v50, %s2913_s16 }
 0x333   :  { %v301_v51 = vpop.permute.xlu1 %300 }
 0x334   :  { %v303_v52 = vsel %vm108_vm1, %v301_v51, 0.0  ;;  %2252 = vmatmul.mubr.msk.f32.vlgmr.msra.gmra.mrb[2].mxu1 %vm108_vm1, %v301_v51 }
 0x335   :  { %2241 = vmatmul.mubr.msk.f32.vlgmr.msra.gmra.mrb[2].mxu0 %vm304_vm5, %v303_v52  ;;  %2496 = vmatpush3.bf16.msra.mxu1 %v3075_v39 }
 0x336   :  { %2497 = vmatprep.subr.bf16.mxu1 %v2909_v0  ;;  %2508 = vmatpush3.bf16.msra.mxu0 %v3038_v9 }
 0x337   :  { %2509 = vmatprep.subr.bf16.mxu0 %v2909_v0  ;;  %2270 = vmatprep.mubr.msk.f32.mxu1 %vm2910_vm0, %v2911_v1 }
 0x338   :  { %2281 = vmatprep.mubr.msk.f32.mxu0 %vm2910_vm0, %v2911_v1 }
 0x339   :  { %2499 = vmatpush3.bf16.msra.mxu1 %v3078_v41 }
 0x33a   :  { %2500 = vmatprep.subr.bf16.mxu1 %v2909_v0  ;;  %2511 = vmatpush3.bf16.msra.mxu0 %v3042_v13 }
 0x33b   :  { %2512 = vmatprep.subr.bf16.mxu0 %v2909_v0 }
 0x33d   :  { %2502 = vmatpush3.bf16.msra.mxu1 %v3082_v44 }
 0x33e   :  { %2503 = vmatprep.subr.bf16.mxu1 %v2909_v0 }
 0x341   :  { %2505 = vmatpush3.bf16.msra.mxu1 %v3087_v48 }
 0x342   :  { %2524 = vmatprep.subr.bf16.mxu1 %v2909_v0 }
 0x407   :  { %v471_v54 = vpop.f32.mrb[2].mxu1 }
 0x408   :  { %v476_v55 = vrot.slane %v471_v54, 7  ;;  %v374_v56 = vpop.f32.mrb[2].mxu0  ;;  %v2253_v57 = vpop.f32.mrb[3].mxu1 }
 0x409   :  { %v375_v58 = vadd.f32 %v374_v56, %v3115_v53  ;;  %v2242_v59 = vpop.f32.mrb[3].mxu0 }
 0x40a   :  { %v478_v60 = vadd.f32 %v476_v55, %v3061_v17 }
 0x40b   :  { %v2049_v61 = vmul.f32 -1.442695, %v375_v58 }
 0x40c   :  { %v2051_v62 = vmul.f32 -1.442695, %v478_v60 }
 0x40d   :  { %2641 = vpow2.f32 %v2049_v61 }
 0x40e   :  { %2643 = vpow2.f32 %v2051_v62 }
 0x40f   :  { %2645 = vtanh.f32 %v375_v58 }
 0x410   :  { %2647 = vtanh.f32 %v478_v60 }
 0x417   :  { %v2642_v63 = vpop.eup %2641 }
 0x418   :  { %v2644_v2 = vpop.eup %2643  ;;  %v382_v3 = vadd.f32 1.0, %v2642_v63 }
 0x419   :  { %v483_v4 = vadd.f32 1.0, %v2644_v2  ;;  %v2646_v5 = vpop.eup %2645 }
 0x41a   :  { %2649 = vrcp.f32 %v382_v3  ;;  %v2648_v6 = vpop.eup %2647 }
 0x41b   :  { %2651 = vrcp.f32 %v483_v4 }
 0x424   :  { %v2650_v7 = vpop.eup %2649 }
 0x425   :  { %v2652_v8 = vpop.eup %2651  ;;  %v385_v10 = vsel %vm3064_vm4, %v2646_v5, %v2650_v7 }
 0x426   :  { %388 = vrot.lane.b32.xlu0 %v385_v10, %s2912_s3  ;;  %v486_v11 = vsel %vm3064_vm4, %v2648_v6, %v2652_v8  ;;  %v386_v19 = vmul.f32 0.0, %v385_v10 }
 0x427   :  { %492 = vrot.lane.b32.xlu1 %v486_v11, %s2912_s3  ;;  %v490_v21 = vmul.f32 %v488_v18, %v486_v11 }
 0x498   :  { %v389_v12 = vpop.permute.xlu0 %388 }
 0x499   :  { %v391_v14 = vmul.f32 %v389_v12, %v385_v10  ;;  %v493_v15 = vpop.permute.xlu1 %492 }
 0x49a   :  { %v495_v16 = vmul.f32 %v493_v15, %v486_v11 }
 0x49b   :  { %393 = vrot.lane.b32.xlu0 %v391_v14, %s2913_s16 }
 0x49c   :  { %497 = vrot.lane.b32.xlu1 %v495_v16, %s2913_s16 }
 0x50d   :  { %v394_v20 = vpop.permute.xlu0 %393 }
 0x50e   :  { %v3128_v22 = vadd.f32 %v394_v20, %v386_v19  ;;  %v498_v23 = vpop.permute.xlu1 %497 }
 0x50f   :  { %v3130_v24 = vadd.f32 %v498_v23, %v490_v21 }
 0x510   :  { %2653 = vtanh.f32 %v3128_v22 }
 0x511   :  { %2655 = vtanh.f32 %v3130_v24  ;;  %v704_v5 = vrot.slane %v3130_v24, 7 }
 0x51a   :  { %v2654_v25 = vpop.eup %2653 }
 0x51b   :  { %v2656_v26 = vpop.eup %2655  ;;  %399 = vrot.lane.b32.xlu0 %v2654_v25, %s2912_s3 }
 0x51c   :  { %503 = vrot.lane.b32.xlu1 %v2656_v26, %s2912_s3 }
 0x58d   :  { %v400_v28 = vpop.permute.xlu0 %399 }
 0x58e   :  { %v3136_v29 = vmul.f32 %v400_v28, %v385_v10  ;;  %v504_v30 = vpop.permute.xlu1 %503 }
 0x58f   :  { %v506_v31 = vmul.f32 %v504_v30, %v486_v11 }
 0x590   :  { %v512_v32 = vrot.slane %v3136_v29, 7 }
 0x591   :  { %508 = vrot.lane.b32.xlu0 %v506_v31, %s2913_s16  ;;  %v616_v33 = vrot.slane %v506_v31, 1 }
 0x592   :  { %513 = vrot.lane.b32.xlu1 %v512_v32, %s2912_s3 }
 0x595   :  { %617 = vrot.lane.b32.xlu0 %v616_v33, %s2913_s16 }
 0x603   :  { %v509_v34 = vpop.permute.xlu0 %508 }
 0x604   :  { %v514_v35 = vpop.permute.xlu1 %513 }
 0x605   :  { %v516_v36 = vsel %vm108_vm1, %v509_v34, %v514_v35 }
 0x606   :  { %v518_v37 = vrot.slane %v516_v36, 1 }
 0x607   :  { %v618_v38 = vpop.permute.xlu0 %617 }
 0x608   :  { %2271 = vmatmul.mubr.msk.f32.vlgmr.msra.gmra.mrb[4].mxu1 %vm304_vm5, %v518_v37  ;;  %2282 = vmatmul.mubr.msk.f32.vlgmr.msra.gmra.mrb[4].mxu0 %vm108_vm1, %v618_v38 }
 0x609   :  { %2514 = vmatpush3.bf16.msra.mxu0 %v3075_v39  ;;  %2526 = vmatpush3.bf16.msra.mxu1 %v3038_v9 }
 0x60a   :  { %2515 = vmatprep.subr.bf16.mxu0 %v2909_v0  ;;  %2527 = vmatprep.subr.bf16.mxu1 %v2909_v0 }
 0x60b   :  { %2300 = vmatprep.mubr.msk.f32.mxu0 %vm2910_vm0, %v2911_v1  ;;  %2311 = vmatprep.mubr.msk.f32.mxu1 %vm2910_vm0, %v2911_v1 }
 0x60d   :  { %2517 = vmatpush3.bf16.msra.mxu0 %v3078_v41  ;;  %2529 = vmatpush3.bf16.msra.mxu1 %v3042_v13 }
 0x60e   :  { %2518 = vmatprep.subr.bf16.mxu0 %v2909_v0  ;;  %2530 = vmatprep.subr.bf16.mxu1 %v2909_v0 }
 0x611   :  { %2520 = vmatpush3.bf16.msra.mxu0 %v3082_v44 }
 0x612   :  { %2521 = vmatprep.subr.bf16.mxu0 %v2909_v0 }
 0x615   :  { %2523 = vmatpush3.bf16.msra.mxu0 %v3087_v48 }
 0x616   :  { %2542 = vmatprep.subr.bf16.mxu0 %v2909_v0 }
 0x6db   :  { %v587_v40 = vpop.f32.mrb[4].mxu1  ;;  %v687_v42 = vpop.f32.mrb[4].mxu0 }
 0x6dc   :  { %v588_v43 = vadd.f32 %v587_v40, %v3115_v53  ;;  %v692_v45 = vrot.slane %v687_v42, 6  ;;  %v2272_v46 = vpop.f32.mrb[5].mxu1  ;;  %v2283_v47 = vpop.f32.mrb[5].mxu0 }
 0x6de   :  { %v2053_v49 = vmul.f32 -1.442695, %v588_v43  ;;  %v694_v50 = vadd.f32 %v692_v45, %v3061_v17 }
 0x6e0   :  { %2657 = vpow2.f32 %v2053_v49  ;;  %v2055_v51 = vmul.f32 -1.442695, %v694_v50 }
 0x6e2   :  { %2659 = vpow2.f32 %v2055_v51 }
 0x6e3   :  { %2661 = vtanh.f32 %v588_v43 }
 0x6ea   :  { %v2658_v52 = vpop.eup %2657 }
 0x6eb   :  { %v595_v54 = vadd.f32 1.0, %v2658_v52 }
 0x6ec   :  { %v2660_v55 = vpop.eup %2659 }
 0x6ed   :  { %2663 = vrcp.f32 %v595_v54  ;;  %v699_v56 = vadd.f32 1.0, %v2660_v55  ;;  %v2662_v57 = vpop.eup %2661 }
 0x6ee   :  { %2665 = vtanh.f32 %v694_v50 }
 0x6ef   :  { %2667 = vrcp.f32 %v699_v56 }
 0x6f7   :  { %v2664_v58 = vpop.eup %2663 }
 0x6f8   :  { %v2666_v59 = vpop.eup %2665  ;;  %v598_v60 = vsel %vm3064_vm4, %v2662_v57, %v2664_v58 }
 0x6f9   :  { %v2668_v61 = vpop.eup %2667  ;;  %601 = vrot.lane.b32.xlu1 %v598_v60, %s2912_s3  ;;  %v599_v6 = vmul.f32 %v598_v60, %v3128_v22 }
 0x6fa   :  { %v702_v62 = vsel %vm3064_vm4, %v2666_v59, %v2668_v61 }
 0x6fb   :  { %708 = vrot.lane.b32.xlu0 %v702_v62, %s2912_s3  ;;  %v706_v10 = vmul.f32 %v704_v5, %v702_v62 }
 0x76b   :  { %v602_v63 = vpop.permute.xlu1 %601 }
 0x76c   :  { %v604_v2 = vmul.f32 %v602_v63, %v598_v60 }
 0x76d   :  { %v709_v3 = vpop.permute.xlu0 %708 }
 0x76e   :  { %v711_v4 = vmul.f32 %v709_v3, %v702_v62  ;;  %606 = vrot.lane.b32.xlu1 %v604_v2, %s2913_s16 }
 0x770   :  { %713 = vrot.lane.b32.xlu0 %v711_v4, %s2913_s16 }
 0x7e0   :  { %v607_v7 = vpop.permute.xlu1 %606 }
 0x7e1   :  { %v3173_v8 = vadd.f32 %v607_v7, %v599_v6 }
 0x7e2   :  { %v714_v11 = vpop.permute.xlu0 %713 }
 0x7e3   :  { %2669 = vtanh.f32 %v3173_v8  ;;  %v3176_v12 = vadd.f32 %v714_v11, %v706_v10 }
 0x7e5   :  { %2671 = vtanh.f32 %v3176_v12  ;;  %v920_v59 = vrot.slane %v3176_v12, 7 }
 0x7ed   :  { %v2670_v14 = vpop.eup %2669 }
 0x7ee   :  { %612 = vrot.lane.b32.xlu1 %v2670_v14, %s2912_s3 }
 0x7ef   :  { %v2672_v15 = vpop.eup %2671 }
 0x7f0   :  { %719 = vrot.lane.b32.xlu0 %v2672_v15, %s2912_s3 }
 0x860   :  { %v613_v16 = vpop.permute.xlu1 %612 }
 0x861   :  { %v3181_v18 = vmul.f32 %v613_v16, %v598_v60 }
 0x862   :  { %v720_v19 = vpop.permute.xlu0 %719 }
 0x863   :  { %v728_v20 = vrot.slane %v3181_v18, 6  ;;  %v722_v21 = vmul.f32 %v720_v19, %v702_v62  ;;  %v1912_v5 = vrot.slane %v3181_v18, 7 }
 0x865   :  { %729 = vrot.lane.b32.xlu0 %v728_v20, %s2912_s3  ;;  %724 = vrot.lane.b32.xlu1 %v722_v21, %s2913_s16  ;;  %v832_v22 = vrot.slane %v722_v21, 2  ;;  %v1928_v12 = vsel %vm1927_vm6, %v3136_v29, %v1912_v5 }
 0x869   :  { %833 = vrot.lane.b32.xlu1 %v832_v22, %s2913_s16 }
 0x8d7   :  { %v725_v23 = vpop.permute.xlu1 %724  ;;  %v730_v24 = vpop.permute.xlu0 %729 }
 0x8d8   :  { %v732_v25 = vsel %vm108_vm1, %v725_v23, %v730_v24 }
 0x8d9   :  { %v734_v26 = vrot.slane %v732_v25, 2 }
 0x8db   :  { %v834_v28 = vpop.permute.xlu1 %833  ;;  %2301 = vmatmul.mubr.msk.f32.vlgmr.msra.gmra.mrb[6].mxu0 %vm304_vm5, %v734_v26 }
 0x8dc   :  { %2312 = vmatmul.mubr.msk.f32.vlgmr.msra.gmra.mrb[6].mxu1 %vm108_vm1, %v834_v28  ;;  %2544 = vmatpush3.bf16.msra.mxu0 %v3038_v9 }
 0x8dd   :  { %2532 = vmatpush3.bf16.msra.mxu1 %v3075_v39  ;;  %2545 = vmatprep.subr.bf16.mxu0 %v2909_v0 }
 0x8de   :  { %2533 = vmatprep.subr.bf16.mxu1 %v2909_v0  ;;  %2330 = vmatprep.mubr.msk.f32.mxu1 %vm2910_vm0, %v2911_v1 }
 0x8df   :  { %2341 = vmatprep.mubr.msk.f32.mxu0 %vm2910_vm0, %v2911_v1 }
 0x8e0   :  { %2547 = vmatpush3.bf16.msra.mxu0 %v3042_v13 }
 0x8e1   :  { %2535 = vmatpush3.bf16.msra.mxu1 %v3078_v41  ;;  %2548 = vmatprep.subr.bf16.mxu0 %v2909_v0 }
 0x8e2   :  { %2536 = vmatprep.subr.bf16.mxu1 %v2909_v0 }
 0x8e5   :  { %2538 = vmatpush3.bf16.msra.mxu1 %v3082_v44 }
 0x8e6   :  { %2539 = vmatprep.subr.bf16.mxu1 %v2909_v0 }
 0x8e9   :  { %2541 = vmatpush3.bf16.msra.mxu1 %v3087_v48 }
 0x8ea   :  { %2560 = vmatprep.subr.bf16.mxu1 %v2909_v0 }
 0x9ae   :  { %v803_v30 = vpop.f32.mrb[6].mxu0 }
 0x9af   :  { %v804_v31 = vadd.f32 %v803_v30, %v3115_v53  ;;  %v2302_v32 = vpop.f32.mrb[7].mxu0  ;;  %v903_v33 = vpop.f32.mrb[6].mxu1 }
 0x9b0   :  { %v908_v34 = vrot.slane %v903_v33, 5  ;;  %v2313_v35 = vpop.f32.mrb[7].mxu1 }
 0x9b1   :  { %v2057_v36 = vmul.f32 -1.442695, %v804_v31 }
 0x9b2   :  { %v910_v37 = vadd.f32 %v908_v34, %v3061_v17 }
 0x9b3   :  { %2673 = vpow2.f32 %v2057_v36 }
 0x9b4   :  { %v2059_v38 = vmul.f32 -1.442695, %v910_v37 }
 0x9b6   :  { %2675 = vpow2.f32 %v2059_v38 }
 0x9b7   :  { %2677 = vtanh.f32 %v804_v31 }
 0x9bd   :  { %v2674_v40 = vpop.eup %2673 }
 0x9be   :  { %v811_v42 = vadd.f32 1.0, %v2674_v40 }
 0x9c0   :  { %v2676_v43 = vpop.eup %2675  ;;  %2679 = vrcp.f32 %v811_v42 }
 0x9c1   :  { %v915_v45 = vadd.f32 1.0, %v2676_v43  ;;  %2681 = vtanh.f32 %v910_v37  ;;  %v2678_v46 = vpop.eup %2677 }
 0x9c3   :  { %2683 = vrcp.f32 %v915_v45 }
 0x9ca   :  { %v2680_v47 = vpop.eup %2679 }
 0x9cb   :  { %v814_v49 = vsel %vm3064_vm4, %v2678_v46, %v2680_v47  ;;  %v2682_v50 = vpop.eup %2681 }
 0x9cc   :  { %817 = vrot.lane.b32.xlu0 %v814_v49, %s2912_s3  ;;  %v815_v58 = vmul.f32 %v814_v49, %v3173_v8 }
 0x9cd   :  { %v2684_v51 = vpop.eup %2683 }
 0x9ce   :  { %v918_v52 = vsel %vm3064_vm4, %v2682_v50, %v2684_v51 }
 0x9cf   :  { %924 = vrot.lane.b32.xlu1 %v918_v52, %s2912_s3  ;;  %v922_v62 = vmul.f32 %v920_v59, %v918_v52 }
 0xa3e   :  { %v818_v54 = vpop.permute.xlu0 %817 }
 0xa3f   :  { %v820_v55 = vmul.f32 %v818_v54, %v814_v49 }
 0xa41   :  { %v925_v56 = vpop.permute.xlu1 %924  ;;  %822 = vrot.lane.b32.xlu0 %v820_v55, %s2913_s16 }
 0xa42   :  { %v927_v57 = vmul.f32 %v925_v56, %v918_v52 }
 0xa44   :  { %929 = vrot.lane.b32.xlu1 %v927_v57, %s2913_s16 }
 0xab3   :  { %v823_v60 = vpop.permute.xlu0 %822 }
 0xab4   :  { %v3218_v61 = vadd.f32 %v823_v60, %v815_v58 }
 0xab6   :  { %2685 = vtanh.f32 %v3218_v61  ;;  %v930_v63 = vpop.permute.xlu1 %929 }
 0xab7   :  { %v3221_v2 = vadd.f32 %v930_v63, %v922_v62 }
 0xab9   :  { %2687 = vtanh.f32 %v3221_v2 }
 0xac0   :  { %v2686_v3 = vpop.eup %2685 }
 0xac1   :  { %828 = vrot.lane.b32.xlu0 %v2686_v3, %s2912_s3 }
 0xac3   :  { %v2688_v4 = vpop.eup %2687 }
 0xac4   :  { %935 = vrot.lane.b32.xlu1 %v2688_v4, %s2912_s3 }
 0xb33   :  { %v829_v6 = vpop.permute.xlu0 %828 }
 0xb34   :  { %v831_v7 = vmul.f32 %v829_v6, %v814_v49 }
 0xb36   :  { %v944_v8 = vrot.slane %v831_v7, 5  ;;  %v1914_v10 = vrot.slane %v831_v7, 6  ;;  %v936_v11 = vpop.permute.xlu1 %935 }
 0xb37   :  { %v938_v14 = vmul.f32 %v936_v11, %v918_v52  ;;  %v1136_v52 = vrot.slane %v3221_v2, 7 }
 0xb38   :  { %v3228_v15 = vsel %vm1929_vm7, %v1928_v12, %v1914_v10  ;;  %945 = vrot.lane.b32.xlu1 %v944_v8, %s2912_s3 }
 0xb39   :  { %940 = vrot.lane.b32.xlu0 %v938_v14, %s2913_s16  ;;  %v1048_v16 = vrot.slane %v938_v14, 3 }
 0xb3d   :  { %1049 = vrot.lane.b32.xlu0 %v1048_v16, %s2913_s16 }
 0xbaa   :  { %v946_v18 = vpop.permute.xlu1 %945 }
 0xbab   :  { %v941_v19 = vpop.permute.xlu0 %940 }
 0xbac   :  { %v948_v20 = vsel %vm108_vm1, %v941_v19, %v946_v18 }
 0xbad   :  { %v950_v21 = vrot.slane %v948_v20, 3 }
 0xbaf   :  { %2331 = vmatmul.mubr.msk.f32.vlgmr.msra.gmra.mrb[8].mxu1 %vm304_vm5, %v950_v21  ;;  %v1050_v22 = vpop.permute.xlu0 %1049 }
 0xbb0   :  { %2342 = vmatmul.mubr.msk.f32.vlgmr.msra.gmra.mrb[8].mxu0 %vm108_vm1, %v1050_v22  ;;  %2562 = vmatpush3.bf16.msra.mxu1 %v3038_v9 }
 0xbb1   :  { %2550 = vmatpush3.bf16.msra.mxu0 %v3075_v39  ;;  %2563 = vmatprep.subr.bf16.mxu1 %v2909_v0 }
 0xbb2   :  { %2551 = vmatprep.subr.bf16.mxu0 %v2909_v0  ;;  %2360 = vmatprep.mubr.msk.f32.mxu0 %vm2910_vm0, %v2911_v1 }
 0xbb3   :  { %2371 = vmatprep.mubr.msk.f32.mxu1 %vm2910_vm0, %v2911_v1 }
 0xbb4   :  { %2565 = vmatpush3.bf16.msra.mxu1 %v3042_v13 }
 0xbb5   :  { %2553 = vmatpush3.bf16.msra.mxu0 %v3078_v41  ;;  %2566 = vmatprep.subr.bf16.mxu1 %v2909_v0 }
 0xbb6   :  { %2554 = vmatprep.subr.bf16.mxu0 %v2909_v0 }
 0xbb9   :  { %2556 = vmatpush3.bf16.msra.mxu0 %v3082_v44 }
 0xbba   :  { %2557 = vmatprep.subr.bf16.mxu0 %v2909_v0 }
 0xbbd   :  { %2559 = vmatpush3.bf16.msra.mxu0 %v3087_v48 }
 0xbbe   :  { %2578 = vmatprep.subr.bf16.mxu0 %v2909_v0 }
 0xc82   :  { %v1019_v29 = vpop.f32.mrb[8].mxu1 }
 0xc83   :  { %v1020_v23 = vadd.f32 %v1019_v29, %v3115_v53  ;;  %v2332_v24 = vpop.f32.mrb[9].mxu1  ;;  %v1119_v25 = vpop.f32.mrb[8].mxu0 }
 0xc84   :  { %v1124_v26 = vrot.slane %v1119_v25, 4  ;;  %v2343_v28 = vpop.f32.mrb[9].mxu0 }
 0xc85   :  { %v2061_v30 = vmul.f32 -1.442695, %v1020_v23 }
 0xc86   :  { %v1126_v31 = vadd.f32 %v1124_v26, %v3061_v17 }
 0xc87   :  { %2689 = vpow2.f32 %v2061_v30 }
 0xc88   :  { %v2063_v32 = vmul.f32 -1.442695, %v1126_v31 }
 0xc8a   :  { %2691 = vpow2.f32 %v2063_v32 }
 0xc8b   :  { %2693 = vtanh.f32 %v1020_v23 }
 0xc91   :  { %v2690_v33 = vpop.eup %2689 }
 0xc92   :  { %v1027_v34 = vadd.f32 1.0, %v2690_v33 }
 0xc94   :  { %v2692_v35 = vpop.eup %2691  ;;  %2695 = vrcp.f32 %v1027_v34 }
 0xc95   :  { %v1131_v36 = vadd.f32 1.0, %v2692_v35  ;;  %2697 = vtanh.f32 %v1126_v31  ;;  %v2694_v37 = vpop.eup %2693 }
 0xc97   :  { %2699 = vrcp.f32 %v1131_v36 }
 0xc9e   :  { %v2696_v38 = vpop.eup %2695 }
 0xc9f   :  { %v1030_v40 = vsel %vm3064_vm4, %v2694_v37, %v2696_v38  ;;  %v2698_v42 = vpop.eup %2697 }
 0xca0   :  { %1033 = vrot.lane.b32.xlu1 %v1030_v40, %s2912_s3  ;;  %v1031_v51 = vmul.f32 %v1030_v40, %v3218_v61 }
 0xca1   :  { %v2700_v43 = vpop.eup %2699 }
 0xca2   :  { %v1134_v45 = vsel %vm3064_vm4, %v2698_v42, %v2700_v43 }
 0xca3   :  { %1140 = vrot.lane.b32.xlu0 %v1134_v45, %s2912_s3  ;;  %v1138_v56 = vmul.f32 %v1136_v52, %v1134_v45 }
 0xd12   :  { %v1034_v46 = vpop.permute.xlu1 %1033 }
 0xd13   :  { %v1036_v47 = vmul.f32 %v1034_v46, %v1030_v40 }
 0xd15   :  { %1038 = vrot.lane.b32.xlu1 %v1036_v47, %s2913_s16  ;;  %v1141_v49 = vpop.permute.xlu0 %1140 }
 0xd16   :  { %v1143_v50 = vmul.f32 %v1141_v49, %v1134_v45 }
 0xd18   :  { %1145 = vrot.lane.b32.xlu0 %v1143_v50, %s2913_s16 }
 0xd87   :  { %v1039_v54 = vpop.permute.xlu1 %1038 }
 0xd88   :  { %v3264_v55 = vadd.f32 %v1039_v54, %v1031_v51 }
 0xd8a   :  { %2701 = vtanh.f32 %v3264_v55  ;;  %v1146_v57 = vpop.permute.xlu0 %1145 }
 0xd8b   :  { %v3267_v58 = vadd.f32 %v1146_v57, %v1138_v56 }
 0xd8d   :  { %2703 = vtanh.f32 %v3267_v58  ;;  %v1352_v42 = vrot.slane %v3267_v58, 7 }
 0xd94   :  { %v2702_v59 = vpop.eup %2701 }
 0xd95   :  { %1044 = vrot.lane.b32.xlu1 %v2702_v59, %s2912_s3 }
 0xd97   :  { %v2704_v60 = vpop.eup %2703 }
 0xd98   :  { %1151 = vrot.lane.b32.xlu0 %v2704_v60, %s2912_s3 }
 0xe07   :  { %v1045_v61 = vpop.permute.xlu1 %1044 }
 0xe08   :  { %v1047_v62 = vmul.f32 %v1045_v61, %v1030_v40 }
 0xe0a   :  { %v1160_v63 = vrot.slane %v1047_v62, 4  ;;  %v1916_v2 = vrot.slane %v1047_v62, 5  ;;  %v1152_v3 = vpop.permute.xlu0 %1151 }
 0xe0b   :  { %v1154_v4 = vmul.f32 %v1152_v3, %v1134_v45 }
 0xe0c   :  { %v3273_v5 = vsel %vm1931_vm8, %v3228_v15, %v1916_v2  ;;  %1161 = vrot.lane.b32.xlu0 %v1160_v63, %s2912_s3 }
 0xe0d   :  { %1156 = vrot.lane.b32.xlu1 %v1154_v4, %s2913_s16  ;;  %v1264_v6 = vrot.slane %v1154_v4, 4 }
 0xe11   :  { %1265 = vrot.lane.b32.xlu1 %v1264_v6, %s2913_s16 }
 0xe7e   :  { %v1162_v7 = vpop.permute.xlu0 %1161 }
 0xe7f   :  { %v1157_v8 = vpop.permute.xlu1 %1156 }
 0xe80   :  { %v1164_v10 = vsel %vm108_vm1, %v1157_v8, %v1162_v7 }
 0xe81   :  { %v1166_v11 = vrot.slane %v1164_v10, 4 }
 0xe83   :  { %v1266_v12 = vpop.permute.xlu1 %1265  ;;  %2361 = vmatmul.mubr.msk.f32.vlgmr.msra.gmra.mrb[10].mxu0 %vm304_vm5, %v1166_v11 }
 0xe84   :  { %2372 = vmatmul.mubr.msk.f32.vlgmr.msra.gmra.mrb[10].mxu1 %vm108_vm1, %v1266_v12  ;;  %2580 = vmatpush3.bf16.msra.mxu0 %v3038_v9 }
 0xe85   :  { %2568 = vmatpush3.bf16.msra.mxu1 %v3075_v39  ;;  %2581 = vmatprep.subr.bf16.mxu0 %v2909_v0 }
 0xe86   :  { %2569 = vmatprep.subr.bf16.mxu1 %v2909_v0  ;;  %2390 = vmatprep.mubr.msk.f32.mxu1 %vm2910_vm0, %v2911_v1 }
 0xe87   :  { %2401 = vmatprep.mubr.msk.f32.mxu0 %vm2910_vm0, %v2911_v1 }
 0xe88   :  { %2583 = vmatpush3.bf16.msra.mxu0 %v3042_v13 }
 0xe89   :  { %2571 = vmatpush3.bf16.msra.mxu1 %v3078_v41  ;;  %2584 = vmatprep.subr.bf16.mxu0 %v2909_v0 }
 0xe8a   :  { %2572 = vmatprep.subr.bf16.mxu1 %v2909_v0 }
 0xe8d   :  { %2574 = vmatpush3.bf16.msra.mxu1 %v3082_v44 }
 0xe8e   :  { %2575 = vmatprep.subr.bf16.mxu1 %v2909_v0 }
 0xe91   :  { %2577 = vmatpush3.bf16.msra.mxu1 %v3087_v48 }
 0xe92   :  { %2596 = vmatprep.subr.bf16.mxu1 %v2909_v0 }
 0xf56   :  { %v1235_v14 = vpop.f32.mrb[10].mxu0 }
 0xf57   :  { %v1236_v15 = vadd.f32 %v1235_v14, %v3115_v53  ;;  %v2362_v16 = vpop.f32.mrb[11].mxu0  ;;  %v1335_v18 = vpop.f32.mrb[10].mxu1 }
 0xf58   :  { %v1340_v19 = vrot.slane %v1335_v18, 3  ;;  %v2373_v20 = vpop.f32.mrb[11].mxu1 }
 0xf59   :  { %v2065_v21 = vmul.f32 -1.442695, %v1236_v15 }
 0xf5a   :  { %v1342_v22 = vadd.f32 %v1340_v19, %v3061_v17 }
 0xf5b   :  { %2705 = vpow2.f32 %v2065_v21 }
 0xf5c   :  { %v2067_v29 = vmul.f32 -1.442695, %v1342_v22 }
 0xf5e   :  { %2707 = vpow2.f32 %v2067_v29 }
 0xf5f   :  { %2709 = vtanh.f32 %v1236_v15 }
 0xf65   :  { %v2706_v23 = vpop.eup %2705 }
 0xf66   :  { %v1243_v24 = vadd.f32 1.0, %v2706_v23 }
 0xf68   :  { %v2708_v25 = vpop.eup %2707  ;;  %2711 = vrcp.f32 %v1243_v24 }
 0xf69   :  { %v1347_v26 = vadd.f32 1.0, %v2708_v25  ;;  %2713 = vtanh.f32 %v1342_v22  ;;  %v2710_v28 = vpop.eup %2709 }
 0xf6b   :  { %2715 = vrcp.f32 %v1347_v26 }
 0xf72   :  { %v2712_v30 = vpop.eup %2711 }
 0xf73   :  { %v1246_v31 = vsel %vm3064_vm4, %v2710_v28, %v2712_v30  ;;  %v2714_v32 = vpop.eup %2713 }
 0xf74   :  { %1249 = vrot.lane.b32.xlu0 %v1246_v31, %s2912_s3  ;;  %v1247_v40 = vmul.f32 %v1246_v31, %v3264_v55 }
 0xf75   :  { %v2716_v33 = vpop.eup %2715 }
 0xf76   :  { %v1350_v34 = vsel %vm3064_vm4, %v2714_v32, %v2716_v33 }
 0xf77   :  { %1356 = vrot.lane.b32.xlu1 %v1350_v34, %s2912_s3  ;;  %v1354_v46 = vmul.f32 %v1352_v42, %v1350_v34 }
 0xfe6   :  { %v1250_v35 = vpop.permute.xlu0 %1249 }
 0xfe7   :  { %v1252_v36 = vmul.f32 %v1250_v35, %v1246_v31 }
 0xfe9   :  { %v1357_v37 = vpop.permute.xlu1 %1356  ;;  %1254 = vrot.lane.b32.xlu0 %v1252_v36, %s2913_s16 }
 0xfea   :  { %v1359_v38 = vmul.f32 %v1357_v37, %v1350_v34 }
 0xfec   :  { %1361 = vrot.lane.b32.xlu1 %v1359_v38, %s2913_s16 }
0x105b   :  { %v1255_v43 = vpop.permute.xlu0 %1254 }
0x105c   :  { %v3309_v45 = vadd.f32 %v1255_v43, %v1247_v40 }
0x105e   :  { %2717 = vtanh.f32 %v3309_v45  ;;  %v1362_v47 = vpop.permute.xlu1 %1361 }
0x105f   :  { %v3312_v49 = vadd.f32 %v1362_v47, %v1354_v46 }
0x1061   :  { %2719 = vtanh.f32 %v3312_v49  ;;  %v1568_v30 = vrot.slane %v3312_v49, 7 }
0x1068   :  { %v2718_v50 = vpop.eup %2717 }
0x1069   :  { %1260 = vrot.lane.b32.xlu0 %v2718_v50, %s2912_s3 }
0x106b   :  { %v2720_v51 = vpop.eup %2719 }
0x106c   :  { %1367 = vrot.lane.b32.xlu1 %v2720_v51, %s2912_s3 }
0x10db   :  { %v1261_v52 = vpop.permute.xlu0 %1260 }
0x10dc   :  { %v1263_v54 = vmul.f32 %v1261_v52, %v1246_v31 }
0x10de   :  { %v1376_v55 = vrot.slane %v1263_v54, 3  ;;  %v1918_v56 = vrot.slane %v1263_v54, 4  ;;  %v1368_v57 = vpop.permute.xlu1 %1367 }
0x10df   :  { %v1370_v58 = vmul.f32 %v1368_v57, %v1350_v34 }
0x10e0   :  { %v3318_v59 = vsel %vm1933_vm9, %v3273_v5, %v1918_v56  ;;  %1377 = vrot.lane.b32.xlu1 %v1376_v55, %s2912_s3 }
0x10e1   :  { %1372 = vrot.lane.b32.xlu0 %v1370_v58, %s2913_s16  ;;  %v1480_v60 = vrot.slane %v1370_v58, 5 }
0x10e5   :  { %1481 = vrot.lane.b32.xlu0 %v1480_v60, %s2913_s16 }
0x1152   :  { %v1378_v61 = vpop.permute.xlu1 %1377 }
0x1153   :  { %v1373_v62 = vpop.permute.xlu0 %1372 }
0x1154   :  { %v1380_v63 = vsel %vm108_vm1, %v1373_v62, %v1378_v61 }
0x1155   :  { %v1382_v2 = vrot.slane %v1380_v63, 5 }
0x1157   :  { %2391 = vmatmul.mubr.msk.f32.vlgmr.msra.gmra.mrb[12].mxu1 %vm304_vm5, %v1382_v2  ;;  %v1482_v3 = vpop.permute.xlu0 %1481 }
0x1158   :  { %2402 = vmatmul.mubr.msk.f32.vlgmr.msra.gmra.mrb[12].mxu0 %vm108_vm1, %v1482_v3  ;;  %2598 = vmatpush3.bf16.msra.mxu1 %v3038_v9 }
0x1159   :  { %2586 = vmatpush3.bf16.msra.mxu0 %v3075_v39  ;;  %2599 = vmatprep.subr.bf16.mxu1 %v2909_v0 }
0x115a   :  { %2587 = vmatprep.subr.bf16.mxu0 %v2909_v0  ;;  %2420 = vmatprep.mubr.msk.f32.mxu0 %vm2910_vm0, %v2911_v1 }
0x115b   :  { %2431 = vmatprep.mubr.msk.f32.mxu1 %vm2910_vm0, %v2911_v1 }
0x115c   :  { %2601 = vmatpush3.bf16.msra.mxu1 %v3042_v13 }
0x115d   :  { %2589 = vmatpush3.bf16.msra.mxu0 %v3078_v41  ;;  %2602 = vmatprep.subr.bf16.mxu1 %v2909_v0 }
0x115e   :  { %2590 = vmatprep.subr.bf16.mxu0 %v2909_v0 }
0x1161   :  { %2592 = vmatpush3.bf16.msra.mxu0 %v3082_v44 }
0x1162   :  { %2593 = vmatprep.subr.bf16.mxu0 %v2909_v0 }
0x1165   :  { %2595 = vmatpush3.bf16.msra.mxu0 %v3087_v48 }
0x1166   :  { %2614 = vmatprep.subr.bf16.mxu0 %v2909_v0 }
0x122a   :  { %v1451_v9 = vpop.f32.mrb[12].mxu1 }
0x122b   :  { %v1452_v4 = vadd.f32 %v1451_v9, %v3115_v53  ;;  %v2392_v5 = vpop.f32.mrb[13].mxu1  ;;  %v1551_v6 = vpop.f32.mrb[12].mxu0 }
0x122c   :  { %v1556_v13 = vrot.slane %v1551_v6, 2  ;;  %v2403_v7 = vpop.f32.mrb[13].mxu0 }
0x122d   :  { %v2069_v8 = vmul.f32 -1.442695, %v1452_v4 }
0x122e   :  { %v1558_v10 = vadd.f32 %v1556_v13, %v3061_v17 }
0x122f   :  { %2721 = vpow2.f32 %v2069_v8 }
0x1230   :  { %v2071_v11 = vmul.f32 -1.442695, %v1558_v10 }
0x1232   :  { %2723 = vpow2.f32 %v2071_v11 }
0x1233   :  { %2725 = vtanh.f32 %v1452_v4 }
0x1239   :  { %v2722_v12 = vpop.eup %2721 }
0x123a   :  { %v1459_v14 = vadd.f32 1.0, %v2722_v12 }
0x123c   :  { %v2724_v15 = vpop.eup %2723  ;;  %2727 = vrcp.f32 %v1459_v14 }
0x123d   :  { %v1563_v16 = vadd.f32 1.0, %v2724_v15  ;;  %2729 = vtanh.f32 %v1558_v10  ;;  %v2726_v18 = vpop.eup %2725 }
0x123f   :  { %2731 = vrcp.f32 %v1563_v16 }
0x1246   :  { %v2728_v19 = vpop.eup %2727 }
0x1247   :  { %v1462_v20 = vsel %vm3064_vm4, %v2726_v18, %v2728_v19  ;;  %v2730_v21 = vpop.eup %2729 }
0x1248   :  { %1465 = vrot.lane.b32.xlu1 %v1462_v20, %s2912_s3  ;;  %v1463_v28 = vmul.f32 %v1462_v20, %v3309_v45 }
0x1249   :  { %v2732_v22 = vpop.eup %2731 }
0x124a   :  { %v1566_v29 = vsel %vm3064_vm4, %v2730_v21, %v2732_v22 }
0x124b   :  { %1572 = vrot.lane.b32.xlu0 %v1566_v29, %s2912_s3  ;;  %v1570_v33 = vmul.f32 %v1568_v30, %v1566_v29 }
0x12ba   :  { %v1466_v23 = vpop.permute.xlu1 %1465 }
0x12bb   :  { %v1468_v24 = vmul.f32 %v1466_v23, %v1462_v20 }
0x12bd   :  { %1470 = vrot.lane.b32.xlu1 %v1468_v24, %s2913_s16  ;;  %v1573_v25 = vpop.permute.xlu0 %1572 }
0x12be   :  { %v1575_v26 = vmul.f32 %v1573_v25, %v1566_v29 }
0x12c0   :  { %1577 = vrot.lane.b32.xlu0 %v1575_v26, %s2913_s16 }
0x132f   :  { %v1471_v31 = vpop.permute.xlu1 %1470 }
0x1330   :  { %v3354_v32 = vadd.f32 %v1471_v31, %v1463_v28 }
0x1332   :  { %2733 = vtanh.f32 %v3354_v32  ;;  %v1578_v34 = vpop.permute.xlu0 %1577 }
0x1333   :  { %v3357_v35 = vadd.f32 %v1578_v34, %v1570_v33  ;;  %v2761_v33 = vld [vmem:[%s3432_s5] sm:$0x1] }
0x1335   :  { %2735 = vtanh.f32 %v3357_v35  ;;  %v1784_v10 = vrot.slane %v3357_v35, 7 }
0x133c   :  { %v2734_v36 = vpop.eup %2733 }
0x133d   :  { %1476 = vrot.lane.b32.xlu1 %v2734_v36, %s2912_s3 }
0x133f   :  { %v2736_v37 = vpop.eup %2735 }
0x1340   :  { %1583 = vrot.lane.b32.xlu0 %v2736_v37, %s2912_s3 }
0x13af   :  { %v1477_v38 = vpop.permute.xlu1 %1476 }
0x13b0   :  { %v1479_v40 = vmul.f32 %v1477_v38, %v1462_v20 }
0x13b2   :  { %v1592_v42 = vrot.slane %v1479_v40, 2  ;;  %v1920_v43 = vrot.slane %v1479_v40, 3  ;;  %v1584_v45 = vpop.permute.xlu0 %1583 }
0x13b3   :  { %v1586_v46 = vmul.f32 %v1584_v45, %v1566_v29 }
0x13b4   :  { %1593 = vrot.lane.b32.xlu0 %v1592_v42, %s2912_s3  ;;  %v3364_v47 = vsel %vm1935_vm10, %v3318_v59, %v1920_v43 }
0x13b5   :  { %1588 = vrot.lane.b32.xlu1 %v1586_v46, %s2913_s16  ;;  %v1696_v49 = vrot.slane %v1586_v46, 6 }
0x13b9   :  { %1697 = vrot.lane.b32.xlu1 %v1696_v49, %s2913_s16 }
0x1426   :  { %v1594_v50 = vpop.permute.xlu0 %1593 }
0x1427   :  { %v1589_v51 = vpop.permute.xlu1 %1588 }
0x1428   :  { %v1596_v52 = vsel %vm108_vm1, %v1589_v51, %v1594_v50  ;;  %v1941_v51 = vld [vmem:[#allocation10] sm:$0xff] }
0x1429   :  { %v1598_v54 = vrot.slane %v1596_v52, 6  ;;  %v1942_v52 = vld [vmem:[#allocation10 + $0x8] sm:$0xff] }
0x142b   :  { %v1698_v55 = vpop.permute.xlu1 %1697  ;;  %2421 = vmatmul.mubr.msk.f32.vlgmr.msra.gmra.mrb[14].mxu0 %vm304_vm5, %v1598_v54  ;;  %v1943_v54 = vld [vmem:[#allocation10 + $0x10] sm:$0xff] }
0x142c   :  { %2432 = vmatmul.mubr.msk.f32.vlgmr.msra.gmra.mrb[14].mxu1 %vm108_vm1, %v1698_v55  ;;  %2461 = vmatprep.mubr.msk.f32.mxu0 %vm2910_vm0, %v2911_v1  ;;  %v2615_v55 = vpack.c.bf16 %v1942_v52, %v1941_v51 }
0x142d   :  { %2604 = vmatpush3.bf16.msra.mxu1 %v3075_v39  ;;  %2450 = vmatprep.mubr.msk.f32.mxu1 %vm2910_vm0, %v2911_v1 }
0x142e   :  { %2605 = vmatprep.subr.bf16.mxu1 %v2909_v0  ;;  %2616 = vmatpush3.bf16.msra.mxu0 %v2615_v55 }
0x142f   :  { %2617 = vmatprep.subr.bf16.mxu0 %v2909_v0 }
0x1431   :  { %2607 = vmatpush3.bf16.msra.mxu1 %v3078_v41 }
0x1432   :  { %2608 = vmatprep.subr.bf16.mxu1 %v2909_v0 }
0x1435   :  { %2610 = vmatpush3.bf16.msra.mxu1 %v3082_v44 }
0x1436   :  { %2611 = vmatprep.subr.bf16.mxu1 %v2909_v0 }
0x1439   :  { %2613 = vmatpush3.bf16.msra.mxu1 %v3087_v48 }
0x14fe   :  { %v1667_v56 = vpop.f32.mrb[14].mxu0 }
0x14ff   :  { %v1668_v57 = vadd.f32 %v1667_v56, %v3115_v53  ;;  %v2422_v58 = vpop.f32.mrb[15].mxu0  ;;  %v1767_v39 = vpop.f32.mrb[14].mxu1  ;;  %v1944_v56 = vld [vmem:[#allocation10 + $0x18] sm:$0xff] }
0x1500   :  { %v1772_v59 = vrot.slane %v1767_v39, 1  ;;  %v2433_v60 = vpop.f32.mrb[15].mxu1 }
0x1501   :  { %v2073_v1 = vmul.f32 -1.442695, %v1668_v57 }
0x1502   :  { %v1774_v61 = vadd.f32 %v1772_v59, %v3061_v17 }
0x1503   :  { %2737 = vpow2.f32 %v2073_v1 }
0x1504   :  { %v2075_v41 = vmul.f32 -1.442695, %v1774_v61 }
0x1506   :  { %2739 = vpow2.f32 %v2075_v41 }
0x1507   :  { %2741 = vtanh.f32 %v1668_v57  ;;  %v2618_v57 = vpack.c.bf16 %v1944_v56, %v1943_v54 }
0x1509   :  { %2619 = vmatpush3.bf16.msra.mxu0 %v2618_v57 }
0x150d   :  { %v2738_v62 = vpop.eup %2737 }
0x150e   :  { %v1675_v63 = vadd.f32 1.0, %v2738_v62 }
0x1510   :  { %v2740_v44 = vpop.eup %2739  ;;  %2743 = vrcp.f32 %v1675_v63 }
0x1511   :  { %v1779_v2 = vadd.f32 1.0, %v2740_v44  ;;  %2745 = vtanh.f32 %v1774_v61  ;;  %v2742_v48 = vpop.eup %2741  ;;  %v2078_v61 = vld [vmem:[%s3434_s7] ss:$0 sm:$0xff] }
0x1513   :  { %2747 = vrcp.f32 %v1779_v2 }
0x151a   :  { %v2744_v53 = vpop.eup %2743 }
0x151b   :  { %v1678_v3 = vsel %vm3064_vm4, %v2742_v48, %v2744_v53  ;;  %v2746_v9 = vpop.eup %2745 }
0x151c   :  { %1681 = vrot.lane.b32.xlu0 %v1678_v3, %s2912_s3  ;;  %v1679_v8 = vmul.f32 %v1678_v3, %v3354_v32 }
0x151d   :  { %v2748_v17 = vpop.eup %2747 }
0x151e   :  { %v1782_v4 = vsel %vm3064_vm4, %v2746_v9, %v2748_v17 }
0x151f   :  { %1788 = vrot.lane.b32.xlu1 %v1782_v4, %s2912_s3  ;;  %v1786_v14 = vmul.f32 %v1784_v10, %v1782_v4 }
0x158e   :  { %v1682_v5 = vpop.permute.xlu0 %1681 }
0x158f   :  { %v1684_v6 = vmul.f32 %v1682_v5, %v1678_v3 }
0x1591   :  { %v1789_v13 = vpop.permute.xlu1 %1788  ;;  %1686 = vrot.lane.b32.xlu0 %v1684_v6, %s2913_s16 }
0x1592   :  { %v1791_v7 = vmul.f32 %v1789_v13, %v1782_v4 }
0x1594   :  { %1793 = vrot.lane.b32.xlu1 %v1791_v7, %s2913_s16 }
0x1603   :  { %v1687_v11 = vpop.permute.xlu0 %1686 }
0x1604   :  { %v1689_v12 = vadd.f32 %v1687_v11, %v1679_v8 }
0x1606   :  { %2749 = vtanh.f32 %v1689_v12  ;;  %v1794_v15 = vpop.permute.xlu1 %1793 }
0x1607   :  { %v1796_v16 = vadd.f32 %v1794_v15, %v1786_v14 }
0x1609   :  { %2751 = vtanh.f32 %v1796_v16 }
0x1610   :  { %v2750_v18 = vpop.eup %2749 }
0x1611   :  { %1692 = vrot.lane.b32.xlu0 %v2750_v18, %s2912_s3 }
0x1613   :  { %v2752_v19 = vpop.eup %2751 }
0x1614   :  { %1799 = vrot.lane.b32.xlu1 %v2752_v19, %s2912_s3 }
0x1683   :  { %v1693_v20 = vpop.permute.xlu0 %1692 }
0x1684   :  { %v1695_v21 = vmul.f32 %v1693_v20, %v1678_v3 }
0x1686   :  { %v1808_v22 = vrot.slane %v1695_v21, 1  ;;  %v1922_v29 = vrot.slane %v1695_v21, 2  ;;  %v1800_v23 = vpop.permute.xlu1 %1799 }
0x1687   :  { %v1802_v24 = vmul.f32 %v1800_v23, %v1782_v4 }
0x1688   :  { %1809 = vrot.lane.b32.xlu1 %v1808_v22, %s2912_s3  ;;  %v1938_v25 = vsel %vm1937_vm11, %v3364_v47, %v1922_v29 }
0x1689   :  { %1804 = vrot.lane.b32.xlu0 %v1802_v24, %s2913_s16 }
0x16fa   :  { %v1810_v26 = vpop.permute.xlu1 %1809 }
0x16fb   :  { %v1805_v28 = vpop.permute.xlu0 %1804 }
0x16fc   :  { %v1812_v30 = vsel %vm108_vm1, %v1805_v28, %v1810_v26 }
0x16fd   :  { %v1814_v31 = vrot.slane %v1812_v30, 7 }
0x16ff   :  { %2451 = vmatmul.mubr.msk.f32.vlgmr.msra.gmra.mrb[16].mxu1 %vm304_vm5, %v1814_v31 }
0x17d2   :  { %v1883_v32 = vpop.f32.mrb[16].mxu1 }
0x17d3   :  { %v1884_v34 = vadd.f32 %v2761_v33, %v1883_v32  ;;  %v2452_v35 = vpop.f32.mrb[17].mxu1 }
0x17d5   :  { %v2077_v36 = vmul.f32 -1.442695, %v1884_v34 }
0x17d7   :  { %2753 = vpow2.f32 %v2077_v36 }
0x17d8   :  { %2755 = vtanh.f32 %v1884_v34 }
0x17e1   :  { %v2754_v37 = vpop.eup %2753 }
0x17e2   :  { %v1891_v38 = vadd.f32 1.0, %v2754_v37  ;;  %v2756_v40 = vpop.eup %2755 }
0x17e4   :  { %2757 = vrcp.f32 %v1891_v38 }
0x17ee   :  { %v2758_v42 = vpop.eup %2757 }
0x17ef   :  { %v1894_v43 = vsel %vm3064_vm4, %v2756_v40, %v2758_v42 }
0x17f0   :  { %1897 = vrot.lane.b32.xlu0 %v1894_v43, %s2912_s3  ;;  %v1895_v47 = vmul.f32 %v1894_v43, %v1689_v12 }
0x1862   :  { %v1898_v45 = vpop.permute.xlu0 %1897 }
0x1863   :  { %v1900_v46 = vmul.f32 %v1898_v45, %v1894_v43 }
0x1865   :  { %1902 = vrot.lane.b32.xlu1 %v1900_v46, %s2913_s16 }
0x18d7   :  { %v1903_v49 = vpop.permute.xlu1 %1902 }
0x18d8   :  { %v1905_v50 = vadd.f32 %v1903_v49, %v1895_v47 }
0x18da   :  { %2759 = vtanh.f32 %v1905_v50 }
0x18e4   :  { %v2760_v27 = vpop.eup %2759 }
0x18e5   :  { %1908 = vrot.lane.b32.xlu0 %v2760_v27, %s2912_s3 }
0x1957   :  { %v1909_v58 = vpop.permute.xlu0 %1908 }
0x1958   :  { %v1911_v39 = vmul.f32 %v1909_v58, %v1894_v43 }
0x195a   :  { %v1925_v59 = vrot.slane %v1911_v39, 1 }
0x195c   :  { %v1940_v60 = vsel %vm1939_vm12, %v1938_v25, %v1925_v59 }
0x195d   :  { %1953 = vrot.lane.b32.xlu1 %v1940_v60, %s2913_s16 }
0x19cf   :  { %v1954_v1 = vpop.permute.xlu1 %1953 }
0x19d0   :  { %2462 = vmatmul.mubr.msk.f32.vlgmr.msra.gmra.mrb[16].mxu0 %vm108_vm1, %v1954_v1 }
0x1aa3   :  { %v2023_v0 = vpop.f32.mrb[16].mxu0 }
0x1aa4   :  { %v2024_v41 = vadd.f32 %v2078_v61, %v2023_v0  ;;  %v2463_v62 = vpop.f32.mrb[17].mxu0 }
0x1aa6   :  { %2027 = vst [vmem:[#allocation11] sm:$0xff] %v2024_v41 }
0x1aa7   :  { %2883 = shalt.err (!%p2880_p2)
}
0x1aa8   :  { %s2884_s9 = scalar_lea.hbm %s3435_s8, 128 }
0x1aa9   :  { %p2885_p3 = scmp.ne.s32.totalorder %s3435_s8, %s2884_s9  ;;  %p2888_p4 = scmp.lt.u32.totalorder %s2884_s9, %s3435_s8 }
0x1aab   :  { %p2890_p5 = pnand %p2888_p4, %p2885_p3 }
0x1aad   :  { %2893 = shalt.err (!%p2890_p5)
}
0x1aae   :  { %2037 = dma.vmem_to_hbm [thread:$0]  %s2035_s29, 128, %s3435_s8, [#allocation4]  }
0x1aaf   :  { %2900 = dma.done.wait [#allocation4], 128  }
0x1ab0   :  { %2901 = vsyncadd [#allocation4], 4294967168 }
0x1ab1   :  { %2041 = vsyncpa [#allocation3], 1 }
0x1ab2   :  { %2042 = vsyncpa [#allocation6], 1 }
0x1ab3   :  { %2043 = vsyncpa [#allocation9], 1 }
0x1ab4   :  { %2044 = vsyncpa [#allocation4], 1 }

</bundles_post_ra>
